<compile_context>
chip_gen: v6e
topology: v6e:2x2x1
jax: 0.10.0
libtpu: 0.0.40
codegen_flags: <defaults>
</compile_context>

<pallas_src>
import math
import functools

import jax
import jax.numpy as jnp
from jax.experimental import pallas as pl
from jax.experimental.pallas import tpu as pltpu

# ----------------------------- model config ---------------------------------
B = 2          # batch
S = 8          # sequence length
D = 32         # d_model
H = 4          # attention heads
D_FF = 64      # feed-forward hidden dim
N_LAYERS = 2   # encoder layers
VOCAB = 50
EPS = 1e-6

_VEC_ROWS_PER_LAYER = 8   # bqkv, bo, ln1_a, ln1_b, b1, b2, ln2_a, ln2_b
_VEC_LANES = 128          # each packed vector row padded to one lane-tile


# ----------------------------- kernel helpers -------------------------------
def _layer_norm(x, a, b):
    # Reference LayerNorm: unbiased std (torch .std default), eps added to std.
    mean = jnp.mean(x, axis=-1, keepdims=True)
    var = jnp.sum((x - mean) ** 2, axis=-1, keepdims=True) / (x.shape[-1] - 1)
    inv = pl.reciprocal(jnp.sqrt(var) + EPS, approx=True)    # EUP slot
    return a * (x - mean) * inv + b


def encoder_stack_kernel(x_ref, bias_ref, wmain_ref, w2_ref, vec_ref, out_ref,
                         *, num_layers, num_heads):
    """Fused forward of N post-norm EncoderLayers + final LayerNorm.

    x_ref:     (B*S, D) activation slab
    bias_ref:  (B*S, B*S) additive attention bias (0 / -1e9 masked / -inf cross-seq)
    wmain_ref: (N*D, 3D+D+D_FF)  per-layer [wqkv | wo | w1], scale folded into Q cols
    w2_ref:    (N*D_FF, D)       per-layer w2
    vec_ref:   (8N+2, 128)       packed biases / LayerNorm vectors (row-per-param)
    """
    rows, d = x_ref.shape
    dk = d // num_heads
    d3 = 3 * d
    d_ff = w2_ref.shape[0] // num_layers

    x = x_ref[...]                 # (rows, d) f32; never leaves VMEM between layers
    bias = bias_ref[...]           # (rows, rows), hoisted once for all layers/heads

    def vrow(i, width):            # one packed (1, width) bias / LN vector
        return vec_ref[i:i + 1, :width]

    for l in range(num_layers):    # static unroll over layers
        r0 = l * d
        wqkv = wmain_ref[r0:r0 + d, 0:d3]                    # (d, 3d)
        wo = wmain_ref[r0:r0 + d, d3:d3 + d]                 # (d, d)
        w1 = wmain_ref[r0:r0 + d, d3 + d:d3 + d + d_ff]      # (d, d_ff)
        w2 = w2_ref[l * d_ff:(l + 1) * d_ff, :]              # (d_ff, d)

        v0 = l * _VEC_ROWS_PER_LAYER
        bqkv = vrow(v0 + 0, d3)
        bo = vrow(v0 + 1, d)
        ln1_a, ln1_b = vrow(v0 + 2, d), vrow(v0 + 3, d)
        b1 = vrow(v0 + 4, d_ff)
        b2 = vrow(v0 + 5, d)
        ln2_a, ln2_b = vrow(v0 + 6, d), vrow(v0 + 7, d)

        # ---- sublayer 0: multi-head self-attention, then residual + post-norm ----
        qkv = jnp.dot(x, wqkv, preferred_element_type=jnp.float32) + bqkv    # (rows, 3d)
        ctx = []
        for h in range(num_heads):                            # static unroll over heads
            qh = qkv[:, h * dk:(h + 1) * dk]                  # (rows, dk)
            kh = qkv[:, d + h * dk:d + (h + 1) * dk]
            vh = qkv[:, 2 * d + h * dk:2 * d + (h + 1) * dk]
            # scores over the whole row slab: q @ k^T (scale already folded into wqkv);
            # cross-sequence pairs are -inf in `bias`, masked keys are -1e9.
            s = jax.lax.dot_general(qh, kh, (((1,), (1,)), ((), ())),
                                    preferred_element_type=jnp.float32) + bias
            s = s - jnp.max(s, axis=-1, keepdims=True)
            p = jnp.exp(s)                                    # exp(-inf) -> 0 exactly
            p = p * pl.reciprocal(jnp.sum(p, axis=-1, keepdims=True), approx=True)
            ctx.append(jnp.dot(p, vh, preferred_element_type=jnp.float32))   # (rows, dk)
        ctx = jnp.concatenate(ctx, axis=-1)                                   # (rows, d)
        attn = jnp.dot(ctx, wo, preferred_element_type=jnp.float32) + bo      # one W_O matmul
        x = _layer_norm(x + attn, ln1_a, ln1_b)               # norm(x + sublayer(x))

        # ---- sublayer 1: position-wise feed-forward, then residual + post-norm ----
        hdn = jnp.maximum(jnp.dot(x, w1, preferred_element_type=jnp.float32) + b1, 0.0)
        ff = jnp.dot(hdn, w2, preferred_element_type=jnp.float32) + b2
        x = _layer_norm(x + ff, ln2_a, ln2_b)                 # norm(x + sublayer(x))

    # NuLog Encoder final LayerNorm (fused).
    base = num_layers * _VEC_ROWS_PER_LAYER
    x = _layer_norm(x, vrow(base, d), vrow(base + 1, d))
    out_ref[...] = x.astype(out_ref.dtype)


# ----------------------------- pallas wrapper --------------------------------
def encoder_forward_fused(x, mask, packed, *, num_heads, num_layers):
    """One pallas_call for the whole encoder stack; activations stay in VMEM."""
    bsz, seq, d = x.shape
    rows = bsz * seq
    x2 = x.reshape(rows, d).astype(jnp.float32)

    # Additive attention bias for the (rows, rows) slab formulation (plain-JAX mask
    # plumbing, built once per call):
    #   same sequence & mask==1 ->   0.0
    #   same sequence & mask==0 -> -1e9     (matches reference masked_fill(mask==0, -1e9))
    #   different sequence      ->  -inf    (excluded from the softmax exactly)
    pos_seq = jnp.arange(rows, dtype=jnp.int32) // seq
    same = pos_seq[:, None] == pos_seq[None, :]
    keep = (mask.reshape(rows) != 0)[None, :]
    attn_bias = jnp.where(same, jnp.where(keep, 0.0, -1e9), -jnp.inf).astype(jnp.float32)

    kernel = functools.partial(encoder_stack_kernel,
                               num_layers=num_layers, num_heads=num_heads)
    out = pl.pallas_call(
        kernel,
        out_shape=jax.ShapeDtypeStruct((rows, d), jnp.float32),
        grid=(1,),
        in_specs=[
            pl.BlockSpec((rows, d), lambda i: (0, 0)),
            pl.BlockSpec((rows, rows), lambda i: (0, 0)),
            pl.BlockSpec(packed["w_main"].shape, lambda i: (0, 0)),
            pl.BlockSpec(packed["w2"].shape, lambda i: (0, 0)),
            pl.BlockSpec(packed["vecs"].shape, lambda i: (0, 0)),
        ],
        out_specs=pl.BlockSpec((rows, d), lambda i: (0, 0)),
        compiler_params=pltpu.CompilerParams(
            # Single-step grid.  Do NOT shard this tiny slab across TensorCores
            # (v7x megacore): it would add per-step overhead and duplicate the
            # parameter DMAs.  Only switch to grid=(num_row_blocks,) with "parallel"
            # once per-core work reaches tens of microseconds.
            dimension_semantics=("arbitrary",)),
    )(x2, attn_bias, packed["w_main"], packed["w2"], packed["vecs"])
    return out.reshape(bsz, seq, d)


# ----------------------------- parameters / packing --------------------------
def make_positional_encoding(max_len, d_model):
    pos = jnp.arange(max_len, dtype=jnp.float32)[:, None]
    div = jnp.exp(jnp.arange(0, d_model, 2, dtype=jnp.float32)
                  * (-math.log(10000.0) / d_model))
    pe = jnp.zeros((max_len, d_model), dtype=jnp.float32)
    pe = pe.at[:, 0::2].set(jnp.sin(pos * div))
    pe = pe.at[:, 1::2].set(jnp.cos(pos * div))
    return pe[None]  # (1, max_len, d_model)


def init_params(key):
    keys = iter(jax.random.split(key, 128))

    def dense(shape, scale=0.05):
        return (scale * jax.random.normal(next(keys), shape)).astype(jnp.float32)

    params = {
        "emb": dense((VOCAB, D), scale=1.0),
        "pe": make_positional_encoding(64, D),
        "ln_f_a": jnp.ones((1, D), jnp.float32),
        "ln_f_b": jnp.zeros((1, D), jnp.float32),
        "layers": [],
    }
    for _ in range(N_LAYERS):
        wq, wk, wv = dense((D, D)), dense((D, D)), dense((D, D))
        bq, bk, bv = dense((1, D)), dense((1, D)), dense((1, D))
        layer = {
            # Q/K/V projections pre-fused into a single (D, 3D) weight / (1, 3D) bias.
            "wqkv": jnp.concatenate([wq, wk, wv], axis=1),
            "bqkv": jnp.concatenate([bq, bk, bv], axis=1),
            "wo": dense((D, D)), "bo": dense((1, D)),
            "ln1_a": jnp.ones((1, D), jnp.float32),
            "ln1_b": jnp.zeros((1, D), jnp.float32),
            "w1": dense((D, D_FF)), "b1": dense((1, D_FF)),
            "w2": dense((D_FF, D)), "b2": dense((1, D)),
            "ln2_a": jnp.ones((1, D), jnp.float32),
            "ln2_b": jnp.zeros((1, D), jnp.float32),
        }
        params["layers"].append(layer)
    return params


def pack_params(params):
    """One-time parameter-prep transform (NOT per-call work):
      * fold 1/sqrt(dk) into the Q columns of wqkv / bqkv,
      * pack per-layer [wqkv|wo|w1] into one (D, 3D+D+D_FF) block, stacked over layers,
      * stack per-layer w2 over layers,
      * put every bias / LayerNorm vector into one 128-lane row of a single array.
    Cuts ~28 tiny HBM->VMEM DMAs down to 3 parameter DMAs."""
    scale = 1.0 / math.sqrt(D // H)

    def pad_row(v):
        v = v.reshape(1, -1).astype(jnp.float32)
        return jnp.pad(v, ((0, 0), (0, _VEC_LANES - v.shape[1])))

    w_main, w2, vec_rows = [], [], []
    for lp in params["layers"]:
        wqkv = lp["wqkv"].at[:, :D].multiply(scale)   # fold attention scale into Q weights
        bqkv = lp["bqkv"].at[:, :D].multiply(scale)   # ... and Q bias
        w_main.append(jnp.concatenate([wqkv, lp["wo"], lp["w1"]], axis=1))   # (D, 192)
        w2.append(lp["w2"])                                                  # (D_FF, D)
        vec_rows += [pad_row(v) for v in (bqkv, lp["bo"], lp["ln1_a"], lp["ln1_b"],
                                          lp["b1"], lp["b2"], lp["ln2_a"], lp["ln2_b"])]
    vec_rows += [pad_row(params["ln_f_a"]), pad_row(params["ln_f_b"])]
    return {
        "w_main": jnp.concatenate(w_main, axis=0),    # (N_LAYERS*D, 3D+D+D_FF)
        "w2": jnp.concatenate(w2, axis=0),            # (N_LAYERS*D_FF, D)
        "vecs": jnp.concatenate(vec_rows, axis=0),    # (8*N_LAYERS+2, 128)
    }


def encoder_decoder_forward(src, tgt, src_mask, tgt_mask, params, packed):
    """Mirrors the NuLog forward path that exercises the EncoderLayers:
    embed + positional-encode src, run the EncoderLayer stack + final LayerNorm."""
    del tgt, tgt_mask  # decoder path unused by this forward
    x = params["emb"][src] * math.sqrt(D) + params["pe"][:, :src.shape[1]]
    return encoder_forward_fused(x.astype(jnp.float32), src_mask, packed,
                                 num_heads=H, num_layers=N_LAYERS)
    # TODO(synk): decode()/generator are not part of this module and are not implemented.


# ----------------------------- main ------------------------------------------
if __name__ == "__main__":
    key = jax.random.PRNGKey(0)
    k_param, k_src = jax.random.split(key)

    params = init_params(k_param)
    packed = pack_params(params)

    src = jax.random.randint(k_src, (B, S), 1, VOCAB, dtype=jnp.int32)
    tgt = src  # unused
    # src_mask: (B, 1, S); 1 = attend, 0 = masked.  Mask the last 2 positions of
    # the second batch element to exercise the masked_fill path.
    src_mask = jnp.ones((B, 1, S), jnp.float32)
    src_mask = src_mask.at[1, 0, S - 2:].set(0.0)
    tgt_mask = jnp.ones((B, 1, S), jnp.float32)  # unused

    out = encoder_decoder_forward(src, tgt, src_mask, tgt_mask, params, packed)
    out = jax.block_until_ready(out)
    assert out.shape == (B, S, D) and out.dtype == jnp.float32
    assert bool(jnp.all(jnp.isfinite(out)))
    print("KERNEL_OK")
</pallas_src>

<mosaic_0001>
module attributes {stable_mosaic.version = 11 : i64} {
  func.func @encoder_stack_kernel(%arg0: i32, %arg1: memref<16x32xf32, #tpu.memory_space<vmem>>, %arg2: memref<16x16xf32, #tpu.memory_space<vmem>>, %arg3: memref<64x192xf32, #tpu.memory_space<vmem>>, %arg4: memref<128x32xf32, #tpu.memory_space<vmem>>, %arg5: memref<18x128xf32, #tpu.memory_space<vmem>>, %arg6: memref<16x32xf32, #tpu.memory_space<vmem>>) attributes {dimension_semantics = [#tpu.dimension_semantics<arbitrary>], iteration_bounds = array<i64: 1>, scalar_prefetch = 0 : i64, scratch_operands = 0 : i64, tpu.core_type = #tpu.core_type<tc>, window_params = [{pipeline_mode = #tpu.pipeline_mode<synchronous>, transform_indices = @transform_0, window_bounds = array<i64: 16, 32>}, {pipeline_mode = #tpu.pipeline_mode<synchronous>, transform_indices = @transform_1, window_bounds = array<i64: 16, 16>}, {pipeline_mode = #tpu.pipeline_mode<synchronous>, transform_indices = @transform_2, window_bounds = array<i64: 64, 192>}, {pipeline_mode = #tpu.pipeline_mode<synchronous>, transform_indices = @transform_3, window_bounds = array<i64: 128, 32>}, {pipeline_mode = #tpu.pipeline_mode<synchronous>, transform_indices = @transform_4, window_bounds = array<i64: 18, 128>}, {pipeline_mode = #tpu.pipeline_mode<synchronous>, transform_indices = @transform_5, window_bounds = array<i64: 16, 32>}]} {
    %c0 = arith.constant 0 : index
    %c0_0 = arith.constant 0 : index
    %0 = vector.load %arg1[%c0, %c0_0] : memref<16x32xf32, #tpu.memory_space<vmem>>, vector<16x32xf32>
    %c0_1 = arith.constant 0 : index
    %c0_2 = arith.constant 0 : index
    %1 = vector.load %arg2[%c0_1, %c0_2] : memref<16x16xf32, #tpu.memory_space<vmem>>, vector<16x16xf32>
    %c0_3 = arith.constant 0 : index
    %c0_4 = arith.constant 0 : index
    %2 = vector.load %arg3[%c0_3, %c0_4] : memref<64x192xf32, #tpu.memory_space<vmem>>, vector<32x96xf32>
    %c0_5 = arith.constant 0 : index
    %c96 = arith.constant 96 : index
    %3 = vector.load %arg3[%c0_5, %c96] : memref<64x192xf32, #tpu.memory_space<vmem>>, vector<32x32xf32>
    %c0_6 = arith.constant 0 : index
    %c128 = arith.constant 128 : index
    %4 = vector.load %arg3[%c0_6, %c128] : memref<64x192xf32, #tpu.memory_space<vmem>>, vector<32x64xf32>
    %c0_7 = arith.constant 0 : index
    %c0_8 = arith.constant 0 : index
    %5 = vector.load %arg4[%c0_7, %c0_8] : memref<128x32xf32, #tpu.memory_space<vmem>>, vector<64x32xf32>
    %c0_9 = arith.constant 0 : index
    %c0_10 = arith.constant 0 : index
    %6 = vector.load %arg5[%c0_9, %c0_10] : memref<18x128xf32, #tpu.memory_space<vmem>>, vector<1x96xf32>
    %c1 = arith.constant 1 : index
    %c0_11 = arith.constant 0 : index
    %7 = vector.load %arg5[%c1, %c0_11] : memref<18x128xf32, #tpu.memory_space<vmem>>, vector<1x32xf32>
    %c2 = arith.constant 2 : index
    %c0_12 = arith.constant 0 : index
    %8 = vector.load %arg5[%c2, %c0_12] : memref<18x128xf32, #tpu.memory_space<vmem>>, vector<1x32xf32>
    %c3 = arith.constant 3 : index
    %c0_13 = arith.constant 0 : index
    %9 = vector.load %arg5[%c3, %c0_13] : memref<18x128xf32, #tpu.memory_space<vmem>>, vector<1x32xf32>
    %c4 = arith.constant 4 : index
    %c0_14 = arith.constant 0 : index
    %10 = vector.load %arg5[%c4, %c0_14] : memref<18x128xf32, #tpu.memory_space<vmem>>, vector<1x64xf32>
    %c5 = arith.constant 5 : index
    %c0_15 = arith.constant 0 : index
    %11 = vector.load %arg5[%c5, %c0_15] : memref<18x128xf32, #tpu.memory_space<vmem>>, vector<1x32xf32>
    %c6 = arith.constant 6 : index
    %c0_16 = arith.constant 0 : index
    %12 = vector.load %arg5[%c6, %c0_16] : memref<18x128xf32, #tpu.memory_space<vmem>>, vector<1x32xf32>
    %c7 = arith.constant 7 : index
    %c0_17 = arith.constant 0 : index
    %13 = vector.load %arg5[%c7, %c0_17] : memref<18x128xf32, #tpu.memory_space<vmem>>, vector<1x32xf32>
    %cst = arith.constant dense<0.000000e+00> : vector<16x96xf32>
    %14 = tpu.matmul %0, %2, %cst {dimension_numbers = #tpu.dot_dimension_numbers<[1], [0], [0], [1], [0, 0, 1, 1], [], []>} : vector<16x32xf32>, vector<32x96xf32>, vector<16x96xf32> -> vector<16x96xf32>
    %15 = vector.broadcast %6 : vector<1x96xf32> to vector<16x96xf32>
    %16 = arith.addf %14, %15 : vector<16x96xf32>
    %17 = vector.extract_strided_slice %16 {offsets = [0, 0], sizes = [16, 8], strides = [1, 1]} : vector<16x96xf32> to vector<16x8xf32>
    %18 = vector.extract_strided_slice %16 {offsets = [0, 32], sizes = [16, 8], strides = [1, 1]} : vector<16x96xf32> to vector<16x8xf32>
    %19 = vector.extract_strided_slice %16 {offsets = [0, 64], sizes = [16, 8], strides = [1, 1]} : vector<16x96xf32> to vector<16x8xf32>
    %cst_18 = arith.constant dense<0.000000e+00> : vector<16x16xf32>
    %20 = tpu.matmul %17, %18, %cst_18 {dimension_numbers = #tpu.dot_dimension_numbers<[1], [1], [0], [0], [0, 0, 1, 0], [], []>} : vector<16x8xf32>, vector<16x8xf32>, vector<16x16xf32> -> vector<16x16xf32>
    %21 = arith.addf %20, %1 : vector<16x16xf32>
    %cst_19 = arith.constant dense<0xFF800000> : vector<16xf32>
    %22 = vector.multi_reduction <maximumf>, %21, %cst_19 [1] : vector<16x16xf32> to vector<16xf32>
    %23 = vector.shape_cast %22 : vector<16xf32> to vector<16x1xf32>
    %24 = vector.broadcast %23 : vector<16x1xf32> to vector<16x16xf32>
    %25 = arith.subf %21, %24 : vector<16x16xf32>
    %26 = math.exp %25 : vector<16x16xf32>
    %cst_20 = arith.constant dense<0.000000e+00> : vector<16xf32>
    %27 = vector.multi_reduction <add>, %26, %cst_20 [1] : vector<16x16xf32> to vector<16xf32>
    %28 = vector.shape_cast %27 : vector<16xf32> to vector<16x1xf32>
    %29 = tpu.reciprocal %28 {approx = true} : vector<16x1xf32> -> vector<16x1xf32>
    %30 = vector.broadcast %29 : vector<16x1xf32> to vector<16x16xf32>
    %31 = arith.mulf %26, %30 : vector<16x16xf32>
    %cst_21 = arith.constant dense<0.000000e+00> : vector<16x8xf32>
    %32 = tpu.matmul %31, %19, %cst_21 {dimension_numbers = #tpu.dot_dimension_numbers<[1], [0], [0], [1], [0, 0, 1, 1], [], []>} : vector<16x16xf32>, vector<16x8xf32>, vector<16x8xf32> -> vector<16x8xf32>
    %33 = vector.extract_strided_slice %16 {offsets = [0, 8], sizes = [16, 8], strides = [1, 1]} : vector<16x96xf32> to vector<16x8xf32>
    %34 = vector.extract_strided_slice %16 {offsets = [0, 40], sizes = [16, 8], strides = [1, 1]} : vector<16x96xf32> to vector<16x8xf32>
    %35 = vector.extract_strided_slice %16 {offsets = [0, 72], sizes = [16, 8], strides = [1, 1]} : vector<16x96xf32> to vector<16x8xf32>
    %cst_22 = arith.constant dense<0.000000e+00> : vector<16x16xf32>
    %36 = tpu.matmul %33, %34, %cst_22 {dimension_numbers = #tpu.dot_dimension_numbers<[1], [1], [0], [0], [0, 0, 1, 0], [], []>} : vector<16x8xf32>, vector<16x8xf32>, vector<16x16xf32> -> vector<16x16xf32>
    %37 = arith.addf %36, %1 : vector<16x16xf32>
    %cst_23 = arith.constant dense<0xFF800000> : vector<16xf32>
    %38 = vector.multi_reduction <maximumf>, %37, %cst_23 [1] : vector<16x16xf32> to vector<16xf32>
    %39 = vector.shape_cast %38 : vector<16xf32> to vector<16x1xf32>
    %40 = vector.broadcast %39 : vector<16x1xf32> to vector<16x16xf32>
    %41 = arith.subf %37, %40 : vector<16x16xf32>
    %42 = math.exp %41 : vector<16x16xf32>
    %cst_24 = arith.constant dense<0.000000e+00> : vector<16xf32>
    %43 = vector.multi_reduction <add>, %42, %cst_24 [1] : vector<16x16xf32> to vector<16xf32>
    %44 = vector.shape_cast %43 : vector<16xf32> to vector<16x1xf32>
    %45 = tpu.reciprocal %44 {approx = true} : vector<16x1xf32> -> vector<16x1xf32>
    %46 = vector.broadcast %45 : vector<16x1xf32> to vector<16x16xf32>
    %47 = arith.mulf %42, %46 : vector<16x16xf32>
    %cst_25 = arith.constant dense<0.000000e+00> : vector<16x8xf32>
    %48 = tpu.matmul %47, %35, %cst_25 {dimension_numbers = #tpu.dot_dimension_numbers<[1], [0], [0], [1], [0, 0, 1, 1], [], []>} : vector<16x16xf32>, vector<16x8xf32>, vector<16x8xf32> -> vector<16x8xf32>
    %49 = vector.extract_strided_slice %16 {offsets = [0, 16], sizes = [16, 8], strides = [1, 1]} : vector<16x96xf32> to vector<16x8xf32>
    %50 = vector.extract_strided_slice %16 {offsets = [0, 48], sizes = [16, 8], strides = [1, 1]} : vector<16x96xf32> to vector<16x8xf32>
    %51 = vector.extract_strided_slice %16 {offsets = [0, 80], sizes = [16, 8], strides = [1, 1]} : vector<16x96xf32> to vector<16x8xf32>
    %cst_26 = arith.constant dense<0.000000e+00> : vector<16x16xf32>
    %52 = tpu.matmul %49, %50, %cst_26 {dimension_numbers = #tpu.dot_dimension_numbers<[1], [1], [0], [0], [0, 0, 1, 0], [], []>} : vector<16x8xf32>, vector<16x8xf32>, vector<16x16xf32> -> vector<16x16xf32>
    %53 = arith.addf %52, %1 : vector<16x16xf32>
    %cst_27 = arith.constant dense<0xFF800000> : vector<16xf32>
    %54 = vector.multi_reduction <maximumf>, %53, %cst_27 [1] : vector<16x16xf32> to vector<16xf32>
    %55 = vector.shape_cast %54 : vector<16xf32> to vector<16x1xf32>
    %56 = vector.broadcast %55 : vector<16x1xf32> to vector<16x16xf32>
    %57 = arith.subf %53, %56 : vector<16x16xf32>
    %58 = math.exp %57 : vector<16x16xf32>
    %cst_28 = arith.constant dense<0.000000e+00> : vector<16xf32>
    %59 = vector.multi_reduction <add>, %58, %cst_28 [1] : vector<16x16xf32> to vector<16xf32>
    %60 = vector.shape_cast %59 : vector<16xf32> to vector<16x1xf32>
    %61 = tpu.reciprocal %60 {approx = true} : vector<16x1xf32> -> vector<16x1xf32>
    %62 = vector.broadcast %61 : vector<16x1xf32> to vector<16x16xf32>
    %63 = arith.mulf %58, %62 : vector<16x16xf32>
    %cst_29 = arith.constant dense<0.000000e+00> : vector<16x8xf32>
    %64 = tpu.matmul %63, %51, %cst_29 {dimension_numbers = #tpu.dot_dimension_numbers<[1], [0], [0], [1], [0, 0, 1, 1], [], []>} : vector<16x16xf32>, vector<16x8xf32>, vector<16x8xf32> -> vector<16x8xf32>
    %65 = vector.extract_strided_slice %16 {offsets = [0, 24], sizes = [16, 8], strides = [1, 1]} : vector<16x96xf32> to vector<16x8xf32>
    %66 = vector.extract_strided_slice %16 {offsets = [0, 56], sizes = [16, 8], strides = [1, 1]} : vector<16x96xf32> to vector<16x8xf32>
    %67 = vector.extract_strided_slice %16 {offsets = [0, 88], sizes = [16, 8], strides = [1, 1]} : vector<16x96xf32> to vector<16x8xf32>
    %cst_30 = arith.constant dense<0.000000e+00> : vector<16x16xf32>
    %68 = tpu.matmul %65, %66, %cst_30 {dimension_numbers = #tpu.dot_dimension_numbers<[1], [1], [0], [0], [0, 0, 1, 0], [], []>} : vector<16x8xf32>, vector<16x8xf32>, vector<16x16xf32> -> vector<16x16xf32>
    %69 = arith.addf %68, %1 : vector<16x16xf32>
    %cst_31 = arith.constant dense<0xFF800000> : vector<16xf32>
    %70 = vector.multi_reduction <maximumf>, %69, %cst_31 [1] : vector<16x16xf32> to vector<16xf32>
    %71 = vector.shape_cast %70 : vector<16xf32> to vector<16x1xf32>
    %72 = vector.broadcast %71 : vector<16x1xf32> to vector<16x16xf32>
    %73 = arith.subf %69, %72 : vector<16x16xf32>
    %74 = math.exp %73 : vector<16x16xf32>
    %cst_32 = arith.constant dense<0.000000e+00> : vector<16xf32>
    %75 = vector.multi_reduction <add>, %74, %cst_32 [1] : vector<16x16xf32> to vector<16xf32>
    %76 = vector.shape_cast %75 : vector<16xf32> to vector<16x1xf32>
    %77 = tpu.reciprocal %76 {approx = true} : vector<16x1xf32> -> vector<16x1xf32>
    %78 = vector.broadcast %77 : vector<16x1xf32> to vector<16x16xf32>
    %79 = arith.mulf %74, %78 : vector<16x16xf32>
    %cst_33 = arith.constant dense<0.000000e+00> : vector<16x8xf32>
    %80 = tpu.matmul %79, %67, %cst_33 {dimension_numbers = #tpu.dot_dimension_numbers<[1], [0], [0], [1], [0, 0, 1, 1], [], []>} : vector<16x16xf32>, vector<16x8xf32>, vector<16x8xf32> -> vector<16x8xf32>
    %81 = tpu.concatenate %32, %48, %64, %80 in 1 : vector<16x8xf32>, vector<16x8xf32>, vector<16x8xf32>, vector<16x8xf32> -> vector<16x32xf32>
    %cst_34 = arith.constant dense<0.000000e+00> : vector<16x32xf32>
    %82 = tpu.matmul %81, %3, %cst_34 {dimension_numbers = #tpu.dot_dimension_numbers<[1], [0], [0], [1], [0, 0, 1, 1], [], []>} : vector<16x32xf32>, vector<32x32xf32>, vector<16x32xf32> -> vector<16x32xf32>
    %83 = vector.broadcast %7 : vector<1x32xf32> to vector<16x32xf32>
    %84 = arith.addf %82, %83 : vector<16x32xf32>
    %85 = arith.addf %0, %84 : vector<16x32xf32>
    %cst_35 = arith.constant dense<0.000000e+00> : vector<16xf32>
    %86 = vector.multi_reduction <add>, %85, %cst_35 [1] : vector<16x32xf32> to vector<16xf32>
    %87 = vector.shape_cast %86 : vector<16xf32> to vector<16x1xf32>
    %cst_36 = arith.constant 3.200000e+01 : f32
    %88 = vector.broadcast %cst_36 : f32 to vector<16x1xf32>
    %89 = arith.divf %87, %88 : vector<16x1xf32>
    %90 = vector.broadcast %89 : vector<16x1xf32> to vector<16x32xf32>
    %91 = arith.subf %85, %90 : vector<16x32xf32>
    %92 = arith.mulf %91, %91 : vector<16x32xf32>
    %cst_37 = arith.constant dense<0.000000e+00> : vector<16xf32>
    %93 = vector.multi_reduction <add>, %92, %cst_37 [1] : vector<16x32xf32> to vector<16xf32>
    %94 = vector.shape_cast %93 : vector<16xf32> to vector<16x1xf32>
    %cst_38 = arith.constant 3.100000e+01 : f32
    %95 = vector.broadcast %cst_38 : f32 to vector<16x1xf32>
    %96 = arith.divf %94, %95 : vector<16x1xf32>
    %97 = math.sqrt %96 : vector<16x1xf32>
    %cst_39 = arith.constant 9.99999997E-7 : f32
    %98 = vector.broadcast %cst_39 : f32 to vector<16x1xf32>
    %99 = arith.addf %97, %98 : vector<16x1xf32>
    %100 = tpu.reciprocal %99 {approx = true} : vector<16x1xf32> -> vector<16x1xf32>
    %101 = vector.broadcast %89 : vector<16x1xf32> to vector<16x32xf32>
    %102 = arith.subf %85, %101 : vector<16x32xf32>
    %103 = vector.broadcast %8 : vector<1x32xf32> to vector<16x32xf32>
    %104 = arith.mulf %103, %102 : vector<16x32xf32>
    %105 = vector.broadcast %100 : vector<16x1xf32> to vector<16x32xf32>
    %106 = arith.mulf %104, %105 : vector<16x32xf32>
    %107 = vector.broadcast %9 : vector<1x32xf32> to vector<16x32xf32>
    %108 = arith.addf %106, %107 : vector<16x32xf32>
    %cst_40 = arith.constant dense<0.000000e+00> : vector<16x64xf32>
    %109 = tpu.matmul %108, %4, %cst_40 {dimension_numbers = #tpu.dot_dimension_numbers<[1], [0], [0], [1], [0, 0, 1, 1], [], []>} : vector<16x32xf32>, vector<32x64xf32>, vector<16x64xf32> -> vector<16x64xf32>
    %110 = vector.broadcast %10 : vector<1x64xf32> to vector<16x64xf32>
    %111 = arith.addf %109, %110 : vector<16x64xf32>
    %cst_41 = arith.constant 0.000000e+00 : f32
    %112 = vector.broadcast %cst_41 : f32 to vector<16x64xf32>
    %113 = arith.maximumf %111, %112 : vector<16x64xf32>
    %cst_42 = arith.constant dense<0.000000e+00> : vector<16x32xf32>
    %114 = tpu.matmul %113, %5, %cst_42 {dimension_numbers = #tpu.dot_dimension_numbers<[1], [0], [0], [1], [0, 0, 1, 1], [], []>} : vector<16x64xf32>, vector<64x32xf32>, vector<16x32xf32> -> vector<16x32xf32>
    %115 = vector.broadcast %11 : vector<1x32xf32> to vector<16x32xf32>
    %116 = arith.addf %114, %115 : vector<16x32xf32>
    %117 = arith.addf %108, %116 : vector<16x32xf32>
    %cst_43 = arith.constant dense<0.000000e+00> : vector<16xf32>
    %118 = vector.multi_reduction <add>, %117, %cst_43 [1] : vector<16x32xf32> to vector<16xf32>
    %119 = vector.shape_cast %118 : vector<16xf32> to vector<16x1xf32>
    %cst_44 = arith.constant 3.200000e+01 : f32
    %120 = vector.broadcast %cst_44 : f32 to vector<16x1xf32>
    %121 = arith.divf %119, %120 : vector<16x1xf32>
    %122 = vector.broadcast %121 : vector<16x1xf32> to vector<16x32xf32>
    %123 = arith.subf %117, %122 : vector<16x32xf32>
    %124 = arith.mulf %123, %123 : vector<16x32xf32>
    %cst_45 = arith.constant dense<0.000000e+00> : vector<16xf32>
    %125 = vector.multi_reduction <add>, %124, %cst_45 [1] : vector<16x32xf32> to vector<16xf32>
    %126 = vector.shape_cast %125 : vector<16xf32> to vector<16x1xf32>
    %cst_46 = arith.constant 3.100000e+01 : f32
    %127 = vector.broadcast %cst_46 : f32 to vector<16x1xf32>
    %128 = arith.divf %126, %127 : vector<16x1xf32>
    %129 = math.sqrt %128 : vector<16x1xf32>
    %cst_47 = arith.constant 9.99999997E-7 : f32
    %130 = vector.broadcast %cst_47 : f32 to vector<16x1xf32>
    %131 = arith.addf %129, %130 : vector<16x1xf32>
    %132 = tpu.reciprocal %131 {approx = true} : vector<16x1xf32> -> vector<16x1xf32>
    %133 = vector.broadcast %121 : vector<16x1xf32> to vector<16x32xf32>
    %134 = arith.subf %117, %133 : vector<16x32xf32>
    %135 = vector.broadcast %12 : vector<1x32xf32> to vector<16x32xf32>
    %136 = arith.mulf %135, %134 : vector<16x32xf32>
    %137 = vector.broadcast %132 : vector<16x1xf32> to vector<16x32xf32>
    %138 = arith.mulf %136, %137 : vector<16x32xf32>
    %139 = vector.broadcast %13 : vector<1x32xf32> to vector<16x32xf32>
    %140 = arith.addf %138, %139 : vector<16x32xf32>
    %c32 = arith.constant 32 : index
    %c0_48 = arith.constant 0 : index
    %141 = vector.load %arg3[%c32, %c0_48] : memref<64x192xf32, #tpu.memory_space<vmem>>, vector<32x96xf32>
    %c32_49 = arith.constant 32 : index
    %c96_50 = arith.constant 96 : index
    %142 = vector.load %arg3[%c32_49, %c96_50] : memref<64x192xf32, #tpu.memory_space<vmem>>, vector<32x32xf32>
    %c32_51 = arith.constant 32 : index
    %c128_52 = arith.constant 128 : index
    %143 = vector.load %arg3[%c32_51, %c128_52] : memref<64x192xf32, #tpu.memory_space<vmem>>, vector<32x64xf32>
    %c64 = arith.constant 64 : index
    %c0_53 = arith.constant 0 : index
    %144 = vector.load %arg4[%c64, %c0_53] : memref<128x32xf32, #tpu.memory_space<vmem>>, vector<64x32xf32>
    %c8 = arith.constant 8 : index
    %c0_54 = arith.constant 0 : index
    %145 = vector.load %arg5[%c8, %c0_54] : memref<18x128xf32, #tpu.memory_space<vmem>>, vector<1x96xf32>
    %c9 = arith.constant 9 : index
    %c0_55 = arith.constant 0 : index
    %146 = vector.load %arg5[%c9, %c0_55] : memref<18x128xf32, #tpu.memory_space<vmem>>, vector<1x32xf32>
    %c10 = arith.constant 10 : index
    %c0_56 = arith.constant 0 : index
    %147 = vector.load %arg5[%c10, %c0_56] : memref<18x128xf32, #tpu.memory_space<vmem>>, vector<1x32xf32>
    %c11 = arith.constant 11 : index
    %c0_57 = arith.constant 0 : index
    %148 = vector.load %arg5[%c11, %c0_57] : memref<18x128xf32, #tpu.memory_space<vmem>>, vector<1x32xf32>
    %c12 = arith.constant 12 : index
    %c0_58 = arith.constant 0 : index
    %149 = vector.load %arg5[%c12, %c0_58] : memref<18x128xf32, #tpu.memory_space<vmem>>, vector<1x64xf32>
    %c13 = arith.constant 13 : index
    %c0_59 = arith.constant 0 : index
    %150 = vector.load %arg5[%c13, %c0_59] : memref<18x128xf32, #tpu.memory_space<vmem>>, vector<1x32xf32>
    %c14 = arith.constant 14 : index
    %c0_60 = arith.constant 0 : index
    %151 = vector.load %arg5[%c14, %c0_60] : memref<18x128xf32, #tpu.memory_space<vmem>>, vector<1x32xf32>
    %c15 = arith.constant 15 : index
    %c0_61 = arith.constant 0 : index
    %152 = vector.load %arg5[%c15, %c0_61] : memref<18x128xf32, #tpu.memory_space<vmem>>, vector<1x32xf32>
    %cst_62 = arith.constant dense<0.000000e+00> : vector<16x96xf32>
    %153 = tpu.matmul %140, %141, %cst_62 {dimension_numbers = #tpu.dot_dimension_numbers<[1], [0], [0], [1], [0, 0, 1, 1], [], []>} : vector<16x32xf32>, vector<32x96xf32>, vector<16x96xf32> -> vector<16x96xf32>
    %154 = vector.broadcast %145 : vector<1x96xf32> to vector<16x96xf32>
    %155 = arith.addf %153, %154 : vector<16x96xf32>
    %156 = vector.extract_strided_slice %155 {offsets = [0, 0], sizes = [16, 8], strides = [1, 1]} : vector<16x96xf32> to vector<16x8xf32>
    %157 = vector.extract_strided_slice %155 {offsets = [0, 32], sizes = [16, 8], strides = [1, 1]} : vector<16x96xf32> to vector<16x8xf32>
    %158 = vector.extract_strided_slice %155 {offsets = [0, 64], sizes = [16, 8], strides = [1, 1]} : vector<16x96xf32> to vector<16x8xf32>
    %cst_63 = arith.constant dense<0.000000e+00> : vector<16x16xf32>
    %159 = tpu.matmul %156, %157, %cst_63 {dimension_numbers = #tpu.dot_dimension_numbers<[1], [1], [0], [0], [0, 0, 1, 0], [], []>} : vector<16x8xf32>, vector<16x8xf32>, vector<16x16xf32> -> vector<16x16xf32>
    %160 = arith.addf %159, %1 : vector<16x16xf32>
    %cst_64 = arith.constant dense<0xFF800000> : vector<16xf32>
    %161 = vector.multi_reduction <maximumf>, %160, %cst_64 [1] : vector<16x16xf32> to vector<16xf32>
    %162 = vector.shape_cast %161 : vector<16xf32> to vector<16x1xf32>
    %163 = vector.broadcast %162 : vector<16x1xf32> to vector<16x16xf32>
    %164 = arith.subf %160, %163 : vector<16x16xf32>
    %165 = math.exp %164 : vector<16x16xf32>
    %cst_65 = arith.constant dense<0.000000e+00> : vector<16xf32>
    %166 = vector.multi_reduction <add>, %165, %cst_65 [1] : vector<16x16xf32> to vector<16xf32>
    %167 = vector.shape_cast %166 : vector<16xf32> to vector<16x1xf32>
    %168 = tpu.reciprocal %167 {approx = true} : vector<16x1xf32> -> vector<16x1xf32>
    %169 = vector.broadcast %168 : vector<16x1xf32> to vector<16x16xf32>
    %170 = arith.mulf %165, %169 : vector<16x16xf32>
    %cst_66 = arith.constant dense<0.000000e+00> : vector<16x8xf32>
    %171 = tpu.matmul %170, %158, %cst_66 {dimension_numbers = #tpu.dot_dimension_numbers<[1], [0], [0], [1], [0, 0, 1, 1], [], []>} : vector<16x16xf32>, vector<16x8xf32>, vector<16x8xf32> -> vector<16x8xf32>
    %172 = vector.extract_strided_slice %155 {offsets = [0, 8], sizes = [16, 8], strides = [1, 1]} : vector<16x96xf32> to vector<16x8xf32>
    %173 = vector.extract_strided_slice %155 {offsets = [0, 40], sizes = [16, 8], strides = [1, 1]} : vector<16x96xf32> to vector<16x8xf32>
    %174 = vector.extract_strided_slice %155 {offsets = [0, 72], sizes = [16, 8], strides = [1, 1]} : vector<16x96xf32> to vector<16x8xf32>
    %cst_67 = arith.constant dense<0.000000e+00> : vector<16x16xf32>
    %175 = tpu.matmul %172, %173, %cst_67 {dimension_numbers = #tpu.dot_dimension_numbers<[1], [1], [0], [0], [0, 0, 1, 0], [], []>} : vector<16x8xf32>, vector<16x8xf32>, vector<16x16xf32> -> vector<16x16xf32>
    %176 = arith.addf %175, %1 : vector<16x16xf32>
    %cst_68 = arith.constant dense<0xFF800000> : vector<16xf32>
    %177 = vector.multi_reduction <maximumf>, %176, %cst_68 [1] : vector<16x16xf32> to vector<16xf32>
    %178 = vector.shape_cast %177 : vector<16xf32> to vector<16x1xf32>
    %179 = vector.broadcast %178 : vector<16x1xf32> to vector<16x16xf32>
    %180 = arith.subf %176, %179 : vector<16x16xf32>
    %181 = math.exp %180 : vector<16x16xf32>
    %cst_69 = arith.constant dense<0.000000e+00> : vector<16xf32>
    %182 = vector.multi_reduction <add>, %181, %cst_69 [1] : vector<16x16xf32> to vector<16xf32>
    %183 = vector.shape_cast %182 : vector<16xf32> to vector<16x1xf32>
    %184 = tpu.reciprocal %183 {approx = true} : vector<16x1xf32> -> vector<16x1xf32>
    %185 = vector.broadcast %184 : vector<16x1xf32> to vector<16x16xf32>
    %186 = arith.mulf %181, %185 : vector<16x16xf32>
    %cst_70 = arith.constant dense<0.000000e+00> : vector<16x8xf32>
    %187 = tpu.matmul %186, %174, %cst_70 {dimension_numbers = #tpu.dot_dimension_numbers<[1], [0], [0], [1], [0, 0, 1, 1], [], []>} : vector<16x16xf32>, vector<16x8xf32>, vector<16x8xf32> -> vector<16x8xf32>
    %188 = vector.extract_strided_slice %155 {offsets = [0, 16], sizes = [16, 8], strides = [1, 1]} : vector<16x96xf32> to vector<16x8xf32>
    %189 = vector.extract_strided_slice %155 {offsets = [0, 48], sizes = [16, 8], strides = [1, 1]} : vector<16x96xf32> to vector<16x8xf32>
    %190 = vector.extract_strided_slice %155 {offsets = [0, 80], sizes = [16, 8], strides = [1, 1]} : vector<16x96xf32> to vector<16x8xf32>
    %cst_71 = arith.constant dense<0.000000e+00> : vector<16x16xf32>
    %191 = tpu.matmul %188, %189, %cst_71 {dimension_numbers = #tpu.dot_dimension_numbers<[1], [1], [0], [0], [0, 0, 1, 0], [], []>} : vector<16x8xf32>, vector<16x8xf32>, vector<16x16xf32> -> vector<16x16xf32>
    %192 = arith.addf %191, %1 : vector<16x16xf32>
    %cst_72 = arith.constant dense<0xFF800000> : vector<16xf32>
    %193 = vector.multi_reduction <maximumf>, %192, %cst_72 [1] : vector<16x16xf32> to vector<16xf32>
    %194 = vector.shape_cast %193 : vector<16xf32> to vector<16x1xf32>
    %195 = vector.broadcast %194 : vector<16x1xf32> to vector<16x16xf32>
    %196 = arith.subf %192, %195 : vector<16x16xf32>
    %197 = math.exp %196 : vector<16x16xf32>
    %cst_73 = arith.constant dense<0.000000e+00> : vector<16xf32>
    %198 = vector.multi_reduction <add>, %197, %cst_73 [1] : vector<16x16xf32> to vector<16xf32>
    %199 = vector.shape_cast %198 : vector<16xf32> to vector<16x1xf32>
    %200 = tpu.reciprocal %199 {approx = true} : vector<16x1xf32> -> vector<16x1xf32>
    %201 = vector.broadcast %200 : vector<16x1xf32> to vector<16x16xf32>
    %202 = arith.mulf %197, %201 : vector<16x16xf32>
    %cst_74 = arith.constant dense<0.000000e+00> : vector<16x8xf32>
    %203 = tpu.matmul %202, %190, %cst_74 {dimension_numbers = #tpu.dot_dimension_numbers<[1], [0], [0], [1], [0, 0, 1, 1], [], []>} : vector<16x16xf32>, vector<16x8xf32>, vector<16x8xf32> -> vector<16x8xf32>
    %204 = vector.extract_strided_slice %155 {offsets = [0, 24], sizes = [16, 8], strides = [1, 1]} : vector<16x96xf32> to vector<16x8xf32>
    %205 = vector.extract_strided_slice %155 {offsets = [0, 56], sizes = [16, 8], strides = [1, 1]} : vector<16x96xf32> to vector<16x8xf32>
    %206 = vector.extract_strided_slice %155 {offsets = [0, 88], sizes = [16, 8], strides = [1, 1]} : vector<16x96xf32> to vector<16x8xf32>
    %cst_75 = arith.constant dense<0.000000e+00> : vector<16x16xf32>
    %207 = tpu.matmul %204, %205, %cst_75 {dimension_numbers = #tpu.dot_dimension_numbers<[1], [1], [0], [0], [0, 0, 1, 0], [], []>} : vector<16x8xf32>, vector<16x8xf32>, vector<16x16xf32> -> vector<16x16xf32>
    %208 = arith.addf %207, %1 : vector<16x16xf32>
    %cst_76 = arith.constant dense<0xFF800000> : vector<16xf32>
    %209 = vector.multi_reduction <maximumf>, %208, %cst_76 [1] : vector<16x16xf32> to vector<16xf32>
    %210 = vector.shape_cast %209 : vector<16xf32> to vector<16x1xf32>
    %211 = vector.broadcast %210 : vector<16x1xf32> to vector<16x16xf32>
    %212 = arith.subf %208, %211 : vector<16x16xf32>
    %213 = math.exp %212 : vector<16x16xf32>
    %cst_77 = arith.constant dense<0.000000e+00> : vector<16xf32>
    %214 = vector.multi_reduction <add>, %213, %cst_77 [1] : vector<16x16xf32> to vector<16xf32>
    %215 = vector.shape_cast %214 : vector<16xf32> to vector<16x1xf32>
    %216 = tpu.reciprocal %215 {approx = true} : vector<16x1xf32> -> vector<16x1xf32>
    %217 = vector.broadcast %216 : vector<16x1xf32> to vector<16x16xf32>
    %218 = arith.mulf %213, %217 : vector<16x16xf32>
    %cst_78 = arith.constant dense<0.000000e+00> : vector<16x8xf32>
    %219 = tpu.matmul %218, %206, %cst_78 {dimension_numbers = #tpu.dot_dimension_numbers<[1], [0], [0], [1], [0, 0, 1, 1], [], []>} : vector<16x16xf32>, vector<16x8xf32>, vector<16x8xf32> -> vector<16x8xf32>
    %220 = tpu.concatenate %171, %187, %203, %219 in 1 : vector<16x8xf32>, vector<16x8xf32>, vector<16x8xf32>, vector<16x8xf32> -> vector<16x32xf32>
    %cst_79 = arith.constant dense<0.000000e+00> : vector<16x32xf32>
    %221 = tpu.matmul %220, %142, %cst_79 {dimension_numbers = #tpu.dot_dimension_numbers<[1], [0], [0], [1], [0, 0, 1, 1], [], []>} : vector<16x32xf32>, vector<32x32xf32>, vector<16x32xf32> -> vector<16x32xf32>
    %222 = vector.broadcast %146 : vector<1x32xf32> to vector<16x32xf32>
    %223 = arith.addf %221, %222 : vector<16x32xf32>
    %224 = arith.addf %140, %223 : vector<16x32xf32>
    %cst_80 = arith.constant dense<0.000000e+00> : vector<16xf32>
    %225 = vector.multi_reduction <add>, %224, %cst_80 [1] : vector<16x32xf32> to vector<16xf32>
    %226 = vector.shape_cast %225 : vector<16xf32> to vector<16x1xf32>
    %cst_81 = arith.constant 3.200000e+01 : f32
    %227 = vector.broadcast %cst_81 : f32 to vector<16x1xf32>
    %228 = arith.divf %226, %227 : vector<16x1xf32>
    %229 = vector.broadcast %228 : vector<16x1xf32> to vector<16x32xf32>
    %230 = arith.subf %224, %229 : vector<16x32xf32>
    %231 = arith.mulf %230, %230 : vector<16x32xf32>
    %cst_82 = arith.constant dense<0.000000e+00> : vector<16xf32>
    %232 = vector.multi_reduction <add>, %231, %cst_82 [1] : vector<16x32xf32> to vector<16xf32>
    %233 = vector.shape_cast %232 : vector<16xf32> to vector<16x1xf32>
    %cst_83 = arith.constant 3.100000e+01 : f32
    %234 = vector.broadcast %cst_83 : f32 to vector<16x1xf32>
    %235 = arith.divf %233, %234 : vector<16x1xf32>
    %236 = math.sqrt %235 : vector<16x1xf32>
    %cst_84 = arith.constant 9.99999997E-7 : f32
    %237 = vector.broadcast %cst_84 : f32 to vector<16x1xf32>
    %238 = arith.addf %236, %237 : vector<16x1xf32>
    %239 = tpu.reciprocal %238 {approx = true} : vector<16x1xf32> -> vector<16x1xf32>
    %240 = vector.broadcast %228 : vector<16x1xf32> to vector<16x32xf32>
    %241 = arith.subf %224, %240 : vector<16x32xf32>
    %242 = vector.broadcast %147 : vector<1x32xf32> to vector<16x32xf32>
    %243 = arith.mulf %242, %241 : vector<16x32xf32>
    %244 = vector.broadcast %239 : vector<16x1xf32> to vector<16x32xf32>
    %245 = arith.mulf %243, %244 : vector<16x32xf32>
    %246 = vector.broadcast %148 : vector<1x32xf32> to vector<16x32xf32>
    %247 = arith.addf %245, %246 : vector<16x32xf32>
    %cst_85 = arith.constant dense<0.000000e+00> : vector<16x64xf32>
    %248 = tpu.matmul %247, %143, %cst_85 {dimension_numbers = #tpu.dot_dimension_numbers<[1], [0], [0], [1], [0, 0, 1, 1], [], []>} : vector<16x32xf32>, vector<32x64xf32>, vector<16x64xf32> -> vector<16x64xf32>
    %249 = vector.broadcast %149 : vector<1x64xf32> to vector<16x64xf32>
    %250 = arith.addf %248, %249 : vector<16x64xf32>
    %cst_86 = arith.constant 0.000000e+00 : f32
    %251 = vector.broadcast %cst_86 : f32 to vector<16x64xf32>
    %252 = arith.maximumf %250, %251 : vector<16x64xf32>
    %cst_87 = arith.constant dense<0.000000e+00> : vector<16x32xf32>
    %253 = tpu.matmul %252, %144, %cst_87 {dimension_numbers = #tpu.dot_dimension_numbers<[1], [0], [0], [1], [0, 0, 1, 1], [], []>} : vector<16x64xf32>, vector<64x32xf32>, vector<16x32xf32> -> vector<16x32xf32>
    %254 = vector.broadcast %150 : vector<1x32xf32> to vector<16x32xf32>
    %255 = arith.addf %253, %254 : vector<16x32xf32>
    %256 = arith.addf %247, %255 : vector<16x32xf32>
    %cst_88 = arith.constant dense<0.000000e+00> : vector<16xf32>
    %257 = vector.multi_reduction <add>, %256, %cst_88 [1] : vector<16x32xf32> to vector<16xf32>
    %258 = vector.shape_cast %257 : vector<16xf32> to vector<16x1xf32>
    %cst_89 = arith.constant 3.200000e+01 : f32
    %259 = vector.broadcast %cst_89 : f32 to vector<16x1xf32>
    %260 = arith.divf %258, %259 : vector<16x1xf32>
    %261 = vector.broadcast %260 : vector<16x1xf32> to vector<16x32xf32>
    %262 = arith.subf %256, %261 : vector<16x32xf32>
    %263 = arith.mulf %262, %262 : vector<16x32xf32>
    %cst_90 = arith.constant dense<0.000000e+00> : vector<16xf32>
    %264 = vector.multi_reduction <add>, %263, %cst_90 [1] : vector<16x32xf32> to vector<16xf32>
    %265 = vector.shape_cast %264 : vector<16xf32> to vector<16x1xf32>
    %cst_91 = arith.constant 3.100000e+01 : f32
    %266 = vector.broadcast %cst_91 : f32 to vector<16x1xf32>
    %267 = arith.divf %265, %266 : vector<16x1xf32>
    %268 = math.sqrt %267 : vector<16x1xf32>
    %cst_92 = arith.constant 9.99999997E-7 : f32
    %269 = vector.broadcast %cst_92 : f32 to vector<16x1xf32>
    %270 = arith.addf %268, %269 : vector<16x1xf32>
    %271 = tpu.reciprocal %270 {approx = true} : vector<16x1xf32> -> vector<16x1xf32>
    %272 = vector.broadcast %260 : vector<16x1xf32> to vector<16x32xf32>
    %273 = arith.subf %256, %272 : vector<16x32xf32>
    %274 = vector.broadcast %151 : vector<1x32xf32> to vector<16x32xf32>
    %275 = arith.mulf %274, %273 : vector<16x32xf32>
    %276 = vector.broadcast %271 : vector<16x1xf32> to vector<16x32xf32>
    %277 = arith.mulf %275, %276 : vector<16x32xf32>
    %278 = vector.broadcast %152 : vector<1x32xf32> to vector<16x32xf32>
    %279 = arith.addf %277, %278 : vector<16x32xf32>
    %c16 = arith.constant 16 : index
    %c0_93 = arith.constant 0 : index
    %280 = vector.load %arg5[%c16, %c0_93] : memref<18x128xf32, #tpu.memory_space<vmem>>, vector<1x32xf32>
    %c17 = arith.constant 17 : index
    %c0_94 = arith.constant 0 : index
    %281 = vector.load %arg5[%c17, %c0_94] : memref<18x128xf32, #tpu.memory_space<vmem>>, vector<1x32xf32>
    %cst_95 = arith.constant dense<0.000000e+00> : vector<16xf32>
    %282 = vector.multi_reduction <add>, %279, %cst_95 [1] : vector<16x32xf32> to vector<16xf32>
    %283 = vector.shape_cast %282 : vector<16xf32> to vector<16x1xf32>
    %cst_96 = arith.constant 3.200000e+01 : f32
    %284 = vector.broadcast %cst_96 : f32 to vector<16x1xf32>
    %285 = arith.divf %283, %284 : vector<16x1xf32>
    %286 = vector.broadcast %285 : vector<16x1xf32> to vector<16x32xf32>
    %287 = arith.subf %279, %286 : vector<16x32xf32>
    %288 = arith.mulf %287, %287 : vector<16x32xf32>
    %cst_97 = arith.constant dense<0.000000e+00> : vector<16xf32>
    %289 = vector.multi_reduction <add>, %288, %cst_97 [1] : vector<16x32xf32> to vector<16xf32>
    %290 = vector.shape_cast %289 : vector<16xf32> to vector<16x1xf32>
    %cst_98 = arith.constant 3.100000e+01 : f32
    %291 = vector.broadcast %cst_98 : f32 to vector<16x1xf32>
    %292 = arith.divf %290, %291 : vector<16x1xf32>
    %293 = math.sqrt %292 : vector<16x1xf32>
    %cst_99 = arith.constant 9.99999997E-7 : f32
    %294 = vector.broadcast %cst_99 : f32 to vector<16x1xf32>
    %295 = arith.addf %293, %294 : vector<16x1xf32>
    %296 = tpu.reciprocal %295 {approx = true} : vector<16x1xf32> -> vector<16x1xf32>
    %297 = vector.broadcast %285 : vector<16x1xf32> to vector<16x32xf32>
    %298 = arith.subf %279, %297 : vector<16x32xf32>
    %299 = vector.broadcast %280 : vector<1x32xf32> to vector<16x32xf32>
    %300 = arith.mulf %299, %298 : vector<16x32xf32>
    %301 = vector.broadcast %296 : vector<16x1xf32> to vector<16x32xf32>
    %302 = arith.mulf %300, %301 : vector<16x32xf32>
    %303 = vector.broadcast %281 : vector<1x32xf32> to vector<16x32xf32>
    %304 = arith.addf %302, %303 : vector<16x32xf32>
    %c0_100 = arith.constant 0 : index
    %c0_101 = arith.constant 0 : index
    %305 = vector.load %arg6[%c0_100, %c0_101] : memref<16x32xf32, #tpu.memory_space<vmem>>, vector<16x32xf32>
    tpu.vector_store %arg6[%c0_100, %c0_101], %304 {strides = array<i32>} : memref<16x32xf32, #tpu.memory_space<vmem>>, vector<16x32xf32>,
    return
  }
  func.func @transform_0(%arg0: i32) -> (i32, i32) {
    %c0_i32 = arith.constant 0 : i32
    %c0_i32_0 = arith.constant 0 : i32
    %c0_i32_1 = arith.constant 0 : i32
    return %c0_i32, %c0_i32_0 : i32, i32
  }
  func.func @transform_1(%arg0: i32) -> (i32, i32) {
    %c0_i32 = arith.constant 0 : i32
    %c0_i32_0 = arith.constant 0 : i32
    %c0_i32_1 = arith.constant 0 : i32
    return %c0_i32, %c0_i32_0 : i32, i32
  }
  func.func @transform_2(%arg0: i32) -> (i32, i32) {
    %c0_i32 = arith.constant 0 : i32
    %c0_i32_0 = arith.constant 0 : i32
    %c0_i32_1 = arith.constant 0 : i32
    return %c0_i32, %c0_i32_0 : i32, i32
  }
  func.func @transform_3(%arg0: i32) -> (i32, i32) {
    %c0_i32 = arith.constant 0 : i32
    %c0_i32_0 = arith.constant 0 : i32
    %c0_i32_1 = arith.constant 0 : i32
    return %c0_i32, %c0_i32_0 : i32, i32
  }
  func.func @transform_4(%arg0: i32) -> (i32, i32) {
    %c0_i32 = arith.constant 0 : i32
    %c0_i32_0 = arith.constant 0 : i32
    %c0_i32_1 = arith.constant 0 : i32
    return %c0_i32, %c0_i32_0 : i32, i32
  }
  func.func @transform_5(%arg0: i32) -> (i32, i32) {
    %c0_i32 = arith.constant 0 : i32
    %c0_i32_0 = arith.constant 0 : i32
    %c0_i32_1 = arith.constant 0 : i32
    return %c0_i32, %c0_i32_0 : i32, i32
  }
}

</mosaic_0001>

<bundles_post_ra>
// kernel: tpu_custom_call.1
= control target key start
LH: loop header
LB: loop body
LE: loop exit
PB: predicated region body
PF: predicated region fallthrough
CT: control target
= control target key end

     0   :  { %10 = vsyncpa [#allocation3], 0  ;;  %s3958_s0 = inlined_call_operand.hbm [shape: f32[16,32], index: 0, kind: input, shape index: {}]   ;;  %s3959_s1 = inlined_call_operand.hbm [shape: f32[16,16], index: 1, kind: input, shape index: {}]   ;;  %s3960_s2 = inlined_call_operand.vmem [shape: f32[64,192], index: 2, kind: input, shape index: {}]   ;;  %s3961_s3 = inlined_call_operand.vmem [shape: f32[128,32], index: 3, kind: input, shape index: {}]   ;;  %s3962_s4 = inlined_call_operand.vmem [shape: f32[18,128], index: 4, kind: input, shape index: {}]   ;;  %s3963_s5 = inlined_call_operand.hbm [shape: f32[16,32], index: 5, kind: output, shape index: {}]  }
   0x1   :  { %11 = vsyncpa [#allocation6], 0 }
   0x2   :  { %12 = vsyncpa [#allocation4], 0  ;;  %s3379_s18 = smov [#allocation2]  }
   0x3   :  { %s18_s19 = sshll.u32 %s3379_s18, 4  ;;  %s19_s19 = int_to_ptr.vmem [resolvable:$true] %s18_s19 }
   0x4   :  { %s3321_s20 = scalar_lea.vmem %s19_s19, 256  ;;  %p3326_p1 = scmp.lt.s32.totalorder %s19_s19, %s19_s19 }
   0x5   :  { %p3322_p0 = scmp.ne.s32.totalorder %s19_s19, %s3321_s20  ;;  %p3327_p2 = scmp.lt.s32.totalorder %s3321_s20, %s3321_s20 }
   0x7   :  { %p3328_p3 = por %p3327_p2, %p3326_p1 }
   0x9   :  { %p3329_p4 = pnand %p3328_p3, %p3322_p0 }
   0xb   :  { %3332 = shalt.err (!%p3329_p4)
}
   0xc   :  { %s3380_s21 = smov 128   ;;  %s3381_s22 = smov 8  }
   0xd   :  { %24 = dma.hbm_to_vmem [thread:$0]  %s3958_s0, 256, %s19_s19, [#allocation3], %s3380_s21, %s3380_s21, %s3381_s22  }
   0xe   :  { %s3382_s25 = smov [#allocation5]  }
   0xf   :  { %s30_s26 = sshll.u32 %s3382_s25, 4  ;;  %s31_s26 = int_to_ptr.vmem [resolvable:$true] %s30_s26 }
  0x10   :  { %s3341_s27 = scalar_lea.vmem %s31_s26, 256  ;;  %p3346_p6 = scmp.lt.s32.totalorder %s31_s26, %s31_s26 }
  0x11   :  { %p3342_p5 = scmp.ne.s32.totalorder %s31_s26, %s3341_s27  ;;  %p3347_p7 = scmp.lt.s32.totalorder %s3341_s27, %s3341_s27 }
  0x13   :  { %p3348_p8 = por %p3347_p7, %p3346_p6 }
  0x15   :  { %p3349_p9 = pnand %p3348_p8, %p3342_p5 }
  0x17   :  { %3352 = shalt.err (!%p3349_p9)
}
  0x18   :  { %36 = dma.hbm_to_vmem [thread:$0]  %s3959_s1, 256, %s31_s26, [#allocation6], %s3380_s21, %s3380_s21, %s3381_s22  }
  0x19   :  { %3373 = dma.done.wait [#allocation3], 256  }
  0x1a   :  { %3374 = vsyncadd [#allocation3], 4294967040 }
  0x1b   :  { %3375 = dma.done.wait [#allocation6], 256  }
  0x1c   :  { %3376 = vsyncadd [#allocation6], 4294967040  ;;  %vm81_vm0 = vcmask 261120   ;;  %v3443_v0 = vld [vmem:[%s3960_s2 + $0x30] sm:$0xff]  ;;  %v3448_v1 = vld [vmem:[%s3960_s2 + $0x20] sm:$0xff]  ;;  %vm169_vm1 = vcmask 64512  }
  0x1d   :  { %2972 = vmatprep.subr.mxu1 %v3443_v0  ;;  %v3451_v2 = vld [vmem:[#allocation2] sm:$0xff]  ;;  %v3457_v3 = vld [vmem:[%s3960_s2 + $0x10] sm:$0xff]  ;;  %v3470_v5 = vld [vmem:[#allocation2 + $0x8] sm:$0xff]  ;;  %s3383_s13 = smov 88   ;;  %s3384_s14 = smov 96   ;;  %vm253_vm2 = vcmask 130048  }
  0x1e   :  { %2973 = vmatpush3.msra.mxu1 %v3443_v0  ;;  %2980 = vmatprep.mubr.msk.f32.mxu1 %vm81_vm0, %v3451_v2  ;;  %v3466_v4 = vld [vmem:[%s3960_s2] sm:$0xff]  ;;  %s3385_s15 = smov 120   ;;  %v3509_v17 = vld [vmem:[#allocation5 + $0x8] sm:$0xff]  ;;  %v3511_v19 = vld [vmem:[#allocation5] sm:$0xff]  ;;  %s3386_s16 = smov 64   ;;  %vm991_vm3 = vcmask 195584  }
  0x1f   :  { %2974 = vmatprep.subr.mxu1 %v3448_v1  ;;  %v2770_v6 = vld [vmem:[%s3962_s4] ss:$0 sm:$0xff]  ;;  %s3387_s17 = smov 56   ;;  %s3388_s18 = smov 80   ;;  %vm1242_vm8 = vcmask 523264  }
  0x20   :  { %2975 = vmatpush3.msra.mxu1 %v3448_v1  ;;  %s3389_s19 = smov 112   ;;  %s3390_s20 = smov 48  }
  0x21   :  { %2976 = vmatprep.subr.mxu1 %v3457_v3  ;;  %s3391_s23 = smov 72   ;;  %s3392_s24 = smov 104  }
  0x22   :  { %2977 = vmatpush3.msra.mxu1 %v3457_v3  ;;  %s3393_s25 = smov 40   ;;  %s3394_s26 = smov 32  }
  0x23   :  { %2978 = vmatprep.subr.mxu1 %v3466_v4  ;;  %s3395_s27 = smov 16   ;;  %s3396_s28 = smov 24  }
  0x24   :  { %2979 = vmatpush3.msra.mxu1 %v3466_v4  ;;  %s3397_s1 = smov [#allocation7]  }
  0x25   :  { %2981 = vmatmul.mubr.msk.f32.vlgmr.msra.gmra.mxu1 %vm81_vm0, %v3470_v5  ;;  %s2757_s8 = sshll.u32 %s3397_s1, 4  ;;  %s2758_s8 = int_to_ptr.vmem [resolvable:$true] %s2757_s8 }
  0x26   :  { %p3358_p11 = scmp.lt.s32.totalorder %s2758_s8, %s2758_s8 }
  0xe5   :  { %v2982_v7 = vpop.f32.mrf.mxu1 }
  0xe6   :  { %v3479_v8 = vadd.f32 %v2982_v7, %v2770_v6 }
  0xe7   :  { %v154_v9 = vpop.f32.mrf.mxu1 }
  0xe8   :  { %v3481_v10 = vadd.f32 %v2770_v6, %v154_v9  ;;  %369 = vrot.lane.b32.xlu1 %v3479_v8, %s3383_s13  ;;  %167 = vrot.lane.b32.xlu0 %v3479_v8, %s3384_s14 }
  0xea   :  { %2987 = vmatprep.mubr.msk.f32.mxu1 %vm169_vm1, %v3481_v10 }
  0xec   :  { %367 = vrot.lane.b32.xlu1 %v3481_v10, %s3383_s13  ;;  %165 = vrot.lane.b32.xlu0 %v3481_v10, %s3384_s14 }
  0xf0   :  { %365 = vrot.lane.b32.xlu1 %v3479_v8, %s3385_s15  ;;  %363 = vrot.lane.b32.xlu0 %v3481_v10, %s3385_s15 }
 0x15a   :  { %v168_v11 = vpop.permute.xlu0 %167  ;;  %v370_v12 = vpop.permute.xlu1 %369 }
 0x15b   :  { %2983 = vmatprep.subr.msk.mxu1 %vm169_vm1, %v168_v11 }
 0x15c   :  { %2984 = vmatpush3.xpose.msk.msra.mxu1 %vm169_vm1, %v168_v11 }
 0x15e   :  { %v166_v13 = vpop.permute.xlu0 %165  ;;  %v368_v15 = vpop.permute.xlu1 %367 }
 0x15f   :  { %2985 = vmatprep.subr.msk.mxu1 %vm169_vm1, %v166_v13 }
 0x160   :  { %2986 = vmatpush3.xpose.msk.msra.mxu1 %vm169_vm1, %v166_v13 }
 0x161   :  { %2997 = vmatprep.subr.msk.mxu1 %vm169_vm1, %v370_v12 }
 0x162   :  { %v364_v14 = vpop.permute.xlu0 %363  ;;  %v366_v16 = vpop.permute.xlu1 %365 }
 0x163   :  { %2988 = vmatmul.mubr.msk.f32.vlgmr.msra.gmra.mxu1 %vm169_vm1, %v3479_v8 }
 0x164   :  { %2998 = vmatpush3.xpose.msk.msra.mxu1 %vm169_vm1, %v370_v12  ;;  %3001 = vmatprep.mubr.msk.f32.mxu1 %vm169_vm1, %v364_v14 }
 0x165   :  { %2999 = vmatprep.subr.msk.mxu1 %vm169_vm1, %v368_v15 }
 0x168   :  { %3000 = vmatpush3.xpose.msk.msra.mxu1 %vm169_vm1, %v368_v15 }
 0x16b   :  { %3002 = vmatmul.mubr.msk.f32.vlgmr.msra.gmra.mxu1 %vm169_vm1, %v366_v16 }
 0x223   :  { %v2989_v18 = vpop.f32.mrf.mxu1 }
 0x224   :  { %v250_v20 = vadd.f32 %v2989_v18, %v3509_v17 }
 0x225   :  { %v244_v21 = vpop.f32.mrf.mxu1 }
 0x226   :  { %v245_v22 = vadd.f32 %v244_v21, %v3511_v19  ;;  %v257_v23 = vsel %vm253_vm2, %v250_v20, -inf }
 0x227   :  { %258 = vmax.xlane.f32.xlu1 %v257_v23 }
 0x228   :  { %v254_v24 = vsel %vm253_vm2, %v245_v22, -inf }
 0x229   :  { %255 = vmax.xlane.f32.xlu0 %v254_v24 }
 0x22b   :  { %v3003_v25 = vpop.f32.mrf.mxu1 }
 0x22c   :  { %v451_v28 = vadd.f32 %v3003_v25, %v3509_v17 }
 0x22d   :  { %v445_v26 = vpop.f32.mrf.mxu1 }
 0x22e   :  { %v446_v27 = vadd.f32 %v445_v26, %v3511_v19  ;;  %v457_v30 = vsel %vm253_vm2, %v451_v28, -inf }
 0x230   :  { %v454_v29 = vsel %vm253_vm2, %v446_v27, -inf }
 0x231   :  { %455 = vmax.xlane.f32.xlu0 %v454_v29 }
 0x235   :  { %458 = vmax.xlane.f32.xlu0 %v457_v30 }
 0x238   :  { %278 = vrot.lane.b32.xlu1 %v3479_v8, %s3386_s16 }
 0x23c   :  { %478 = vrot.lane.b32.xlu1 %v3479_v8, %s3387_s17 }
 0x240   :  { %476 = vrot.lane.b32.xlu1 %v3481_v10, %s3387_s17 }
 0x24b   :  { %276 = vrot.lane.b32.xlu0 %v3481_v10, %s3386_s16 }
 0x2b0   :  { %v259_v31 = vpop.xlane.xlu1 %258 }
 0x2b1   :  { %v261_v32 = vsub.f32 %v250_v20, %v259_v31 }
 0x2b2   :  { %v256_v33 = vpop.xlane.xlu0 %255 }
 0x2b3   :  { %v264_v34 = vmul.f32 1.442695, %v261_v32  ;;  %v260_v35 = vsub.f32 %v245_v22, %v256_v33 }
 0x2b4   :  { %v279_v36 = vpop.permute.xlu1 %278 }
 0x2b5   :  { %3207 = vpow2.f32 %v264_v34  ;;  %v262_v37 = vmul.f32 1.442695, %v260_v35  ;;  %2990 = vmatprep.subr.mxu0 %v279_v36 }
 0x2b6   :  { %2991 = vmatpush3.msra.mxu0 %v279_v36 }
 0x2b7   :  { %3209 = vpow2.f32 %v262_v37 }
 0x2b8   :  { %v479_v46 = vpop.permute.xlu1 %478 }
 0x2ba   :  { %v456_v38 = vpop.xlane.xlu0 %455 }
 0x2bb   :  { %v460_v50 = vsub.f32 %v446_v27, %v456_v38 }
 0x2bc   :  { %v477_v54 = vpop.permute.xlu1 %476 }
 0x2bd   :  { %v462_v51 = vmul.f32 1.442695, %v460_v50 }
 0x2be   :  { %v459_v39 = vpop.xlane.xlu0 %458 }
 0x2bf   :  { %v461_v40 = vsub.f32 %v451_v28, %v459_v39 }
 0x2c1   :  { %v464_v41 = vmul.f32 1.442695, %v461_v40 }
 0x2c2   :  { %v3208_v42 = vpop.eup %3207  ;;  %v277_v43 = vpop.permute.xlu0 %276 }
 0x2c3   :  { %3211 = vpow2.f32 %v464_v41  ;;  %2992 = vmatprep.subr.mxu0 %v277_v43  ;;  %v269_v44 = vsel %vm253_vm2, %v3208_v42, 0.0 }
 0x2c4   :  { %v3210_v45 = vpop.eup %3209  ;;  %270 = vadd.xlane.f32.xlu0 %v269_v44  ;;  %2993 = vmatpush3.msra.mxu0 %v277_v43  ;;  %3213 = vpow2.f32 %v462_v51 }
 0x2c5   :  { %3004 = vmatprep.subr.mxu0 %v479_v46  ;;  %v266_v47 = vsel %vm253_vm2, %v3210_v45, 0.0 }
 0x2c6   :  { %267 = vadd.xlane.f32.xlu1 %v266_v47 }
 0x2d0   :  { %v3212_v48 = vpop.eup %3211 }
 0x2d1   :  { %v469_v49 = vsel %vm253_vm2, %v3212_v48, 0.0  ;;  %v3214_v52 = vpop.eup %3213 }
 0x2d2   :  { %470 = vadd.xlane.f32.xlu0 %v469_v49  ;;  %v466_v53 = vsel %vm253_vm2, %v3214_v52, 0.0 }
 0x2d7   :  { %567 = vrot.lane.b32.xlu1 %v3481_v10, %s3388_s18 }
 0x2e8   :  { %569 = vrot.lane.b32.xlu0 %v3479_v8, %s3388_s18 }
 0x2ec   :  { %563 = vrot.lane.b32.xlu0 %v3481_v10, %s3389_s19 }
 0x2fb   :  { %467 = vadd.xlane.f32.xlu1 %v466_v53 }
 0x30c   :  { %565 = vrot.lane.b32.xlu1 %v3479_v8, %s3389_s19 }
 0x34d   :  { %v271_v55 = vpop.xlane.xlu0 %270 }
 0x34e   :  { %3215 = vrcp.f32 %v271_v55 }
 0x34f   :  { %v268_v56 = vpop.xlane.xlu1 %267 }
 0x350   :  { %3217 = vrcp.f32 %v268_v56 }
 0x353   :  { %v568_v63 = vpop.permute.xlu1 %567 }
 0x35b   :  { %v3216_v57 = vpop.eup %3215  ;;  %v471_v59 = vpop.xlane.xlu0 %470 }
 0x35c   :  { %v275_v61 = vmul.f32 %v3216_v57, %v3208_v42  ;;  %3219 = vrcp.f32 %v471_v59 }
 0x35d   :  { %v3218_v58 = vpop.eup %3217 }
 0x35e   :  { %v274_v60 = vmul.f32 %v3218_v58, %v3210_v45 }
 0x35f   :  { %v570_v62 = vpop.permute.xlu0 %569 }
 0x360   :  { %2994 = vmatprep.mubr.msk.f32.mxu0 %vm253_vm2, %v274_v60 }
 0x361   :  { %2995 = vmatmul.mubr.msk.f32.vlgmr.msra.gmra.mxu0 %vm253_vm2, %v275_v61 }
 0x362   :  { %3005 = vmatpush3.msra.mxu0 %v479_v46 }
 0x363   :  { %3006 = vmatprep.subr.mxu0 %v477_v54  ;;  %v564_v13 = vpop.permute.xlu0 %563 }
 0x364   :  { %3007 = vmatpush3.msra.mxu0 %v477_v54 }
 0x365   :  { %3011 = vmatprep.subr.msk.mxu0 %vm169_vm1, %v570_v62 }
 0x369   :  { %v3220_v7 = vpop.eup %3219 }
 0x36a   :  { %v475_v12 = vmul.f32 %v3220_v7, %v3212_v48 }
 0x384   :  { %v468_v6 = vpop.xlane.xlu1 %467 }
 0x385   :  { %3221 = vrcp.f32 %v468_v6 }
 0x388   :  { %v566_v14 = vpop.permute.xlu1 %565 }
 0x392   :  { %v3222_v9 = vpop.eup %3221 }
 0x393   :  { %v474_v11 = vmul.f32 %v3222_v9, %v3214_v52 }
 0x395   :  { %3008 = vmatprep.mubr.msk.f32.mxu0 %vm253_vm2, %v474_v11 }
 0x396   :  { %3009 = vmatmul.mubr.msk.f32.vlgmr.msra.gmra.mxu0 %vm253_vm2, %v475_v12 }
 0x397   :  { %3012 = vmatpush3.xpose.msk.msra.mxu0 %vm169_vm1, %v570_v62  ;;  %3015 = vmatprep.mubr.msk.f32.mxu0 %vm169_vm1, %v564_v13 }
 0x398   :  { %3013 = vmatprep.subr.msk.mxu0 %vm169_vm1, %v568_v63 }
 0x39b   :  { %3014 = vmatpush3.xpose.msk.msra.mxu0 %vm169_vm1, %v568_v63 }
 0x39e   :  { %3016 = vmatmul.mubr.msk.f32.vlgmr.msra.gmra.mxu0 %vm169_vm1, %v566_v14 }
 0x421   :  { %v3551_v15 = vpop.f32.mrf.mxu0 }
 0x423   :  { %v3553_v16 = vpop.f32.mrf.mxu0 }
 0x456   :  { %v3555_v18 = vpop.f32.mrf.mxu0 }
 0x458   :  { %v3557_v20 = vpop.f32.mrf.mxu0 }
 0x45e   :  { %v3017_v21 = vpop.f32.mrf.mxu0 }
 0x45f   :  { %v651_v22 = vadd.f32 %v3017_v21, %v3509_v17 }
 0x460   :  { %v645_v23 = vpop.f32.mrf.mxu0 }
 0x461   :  { %v646_v24 = vadd.f32 %v645_v23, %v3511_v19  ;;  %v657_v25 = vsel %vm253_vm2, %v651_v22, -inf }
 0x462   :  { %658 = vmax.xlane.f32.xlu1 %v657_v25 }
 0x463   :  { %v654_v26 = vsel %vm253_vm2, %v646_v24, -inf }
 0x464   :  { %655 = vmax.xlane.f32.xlu0 %v654_v26 }
 0x473   :  { %678 = vrot.lane.b32.xlu1 %v3479_v8, %s3390_s20 }
 0x477   :  { %769 = vrot.lane.b32.xlu1 %v3479_v8, %s3391_s23 }
 0x47b   :  { %767 = vrot.lane.b32.xlu1 %v3481_v10, %s3391_s23 }
 0x47f   :  { %765 = vrot.lane.b32.xlu1 %v3479_v8, %s3392_s24 }
 0x4eb   :  { %v659_v27 = vpop.xlane.xlu1 %658 }
 0x4ec   :  { %v661_v28 = vsub.f32 %v651_v22, %v659_v27 }
 0x4ed   :  { %v656_v29 = vpop.xlane.xlu0 %655 }
 0x4ee   :  { %v664_v30 = vmul.f32 1.442695, %v661_v28  ;;  %v660_v31 = vsub.f32 %v646_v24, %v656_v29 }
 0x4ef   :  { %v679_v32 = vpop.permute.xlu1 %678 }
 0x4f0   :  { %3223 = vpow2.f32 %v664_v30  ;;  %v662_v33 = vmul.f32 1.442695, %v660_v31  ;;  %3018 = vmatprep.subr.mxu1 %v679_v32 }
 0x4f1   :  { %3019 = vmatpush3.msra.mxu1 %v679_v32 }
 0x4f2   :  { %3225 = vpow2.f32 %v662_v33 }
 0x4f3   :  { %v770_v41 = vpop.permute.xlu1 %769 }
 0x4f7   :  { %v768_v47 = vpop.permute.xlu1 %767 }
 0x4fb   :  { %v766_v48 = vpop.permute.xlu1 %765 }
 0x4fd   :  { %v3224_v34 = vpop.eup %3223 }
 0x4fe   :  { %v669_v35 = vsel %vm253_vm2, %v3224_v34, 0.0 }
 0x4ff   :  { %v3226_v36 = vpop.eup %3225  ;;  %670 = vadd.xlane.f32.xlu0 %v669_v35 }
 0x500   :  { %v666_v37 = vsel %vm253_vm2, %v3226_v36, 0.0 }
 0x503   :  { %667 = vadd.xlane.f32.xlu0 %v666_v37 }
 0x519   :  { %676 = vrot.lane.b32.xlu0 %v3481_v10, %s3390_s20 }
 0x51d   :  { %763 = vrot.lane.b32.xlu0 %v3481_v10, %s3392_s24 }
 0x588   :  { %v671_v38 = vpop.xlane.xlu0 %670 }
 0x589   :  { %3227 = vrcp.f32 %v671_v38 }
 0x58c   :  { %v668_v39 = vpop.xlane.xlu0 %667 }
 0x58d   :  { %3229 = vrcp.f32 %v668_v39 }
 0x590   :  { %v677_v40 = vpop.permute.xlu0 %676 }
 0x591   :  { %3020 = vmatprep.subr.mxu1 %v677_v40 }
 0x592   :  { %3021 = vmatpush3.msra.mxu1 %v677_v40 }
 0x593   :  { %3025 = vmatprep.subr.msk.mxu1 %vm169_vm1, %v770_v41 }
 0x594   :  { %v764_v46 = vpop.permute.xlu0 %763 }
 0x596   :  { %v3228_v42 = vpop.eup %3227 }
 0x597   :  { %v675_v45 = vmul.f32 %v3228_v42, %v3224_v34 }
 0x59a   :  { %v3230_v43 = vpop.eup %3229 }
 0x59b   :  { %v674_v44 = vmul.f32 %v3230_v43, %v3226_v36 }
 0x59d   :  { %3022 = vmatprep.mubr.msk.f32.mxu1 %vm253_vm2, %v674_v44 }
 0x59e   :  { %3023 = vmatmul.mubr.msk.f32.vlgmr.msra.gmra.mxu1 %vm253_vm2, %v675_v45 }
 0x59f   :  { %3026 = vmatpush3.xpose.msk.msra.mxu1 %vm169_vm1, %v770_v41  ;;  %3029 = vmatprep.mubr.msk.f32.mxu1 %vm169_vm1, %v764_v46 }
 0x5a0   :  { %3027 = vmatprep.subr.msk.mxu1 %vm169_vm1, %v768_v47 }
 0x5a3   :  { %3028 = vmatpush3.xpose.msk.msra.mxu1 %vm169_vm1, %v768_v47 }
 0x5a6   :  { %3030 = vmatmul.mubr.msk.f32.vlgmr.msra.gmra.mxu1 %vm169_vm1, %v766_v48 }
 0x65e   :  { %v3024_v49 = vpop.f32.mrf.mxu1 }
 0x660   :  { %v754_v50 = vpop.f32.mrf.mxu1 }
 0x666   :  { %v3031_v51 = vpop.f32.mrf.mxu1 }
 0x667   :  { %v851_v52 = vadd.f32 %v3031_v51, %v3509_v17  ;;  %v59_v51 = vld [vmem:[%s3960_s2 + $0x28] sm:$0xff] }
 0x668   :  { %v845_v53 = vpop.f32.mrf.mxu1 }
 0x669   :  { %v846_v54 = vadd.f32 %v845_v53, %v3511_v19  ;;  %v857_v55 = vsel %vm253_vm2, %v851_v52, -inf  ;;  %v57_v53 = vld [vmem:[%s3960_s2 + $0x8] sm:$0xff] }
 0x66a   :  { %858 = vmax.xlane.f32.xlu1 %v857_v55  ;;  %v67_v55 = vld [vmem:[%s3961_s3 + $0x30] sm:$0xff] }
 0x66b   :  { %v854_v56 = vsel %vm253_vm2, %v846_v54, -inf }
 0x66c   :  { %855 = vmax.xlane.f32.xlu0 %v854_v56  ;;  %v66_v56 = vld [vmem:[%s3961_s3 + $0x28] sm:$0xff] }
 0x67b   :  { %878 = vrot.lane.b32.xlu1 %v3479_v8, %s3393_s25 }
 0x67f   :  { %1008 = vrot.lane.b32.xlu1 %v3443_v0, %s3394_s26 }
 0x683   :  { %1006 = vrot.lane.b32.xlu1 %v3448_v1, %s3394_s26 }
 0x687   :  { %1004 = vrot.lane.b32.xlu1 %v3457_v3, %s3394_s26 }
 0x68b   :  { %973 = vrot.lane.b32.xlu1 %v754_v50, %s3395_s27 }
 0x6f3   :  { %v859_v57 = vpop.xlane.xlu1 %858 }
 0x6f4   :  { %v861_v58 = vsub.f32 %v851_v52, %v859_v57  ;;  %v58_v52 = vld [vmem:[%s3960_s2 + $0x18] sm:$0xff]  ;;  %v65_v57 = vld [vmem:[%s3961_s3 + $0x20] sm:$0xff] }
 0x6f5   :  { %v856_v59 = vpop.xlane.xlu0 %855 }
 0x6f6   :  { %v864_v60 = vmul.f32 1.442695, %v861_v58  ;;  %v860_v61 = vsub.f32 %v846_v54, %v856_v59  ;;  %v68_v54 = vld [vmem:[%s3961_s3 + $0x38] sm:$0xff] }
 0x6f7   :  { %v879_v62 = vpop.permute.xlu1 %878 }
 0x6f8   :  { %3231 = vpow2.f32 %v864_v60  ;;  %v862_v8 = vmul.f32 1.442695, %v860_v61  ;;  %3032 = vmatprep.subr.mxu0 %v879_v62 }
 0x6f9   :  { %3033 = vmatpush3.msra.mxu0 %v879_v62 }
 0x6fa   :  { %3233 = vpow2.f32 %v862_v8 }
 0x6fb   :  { %v1009_v11 = vpop.permute.xlu1 %1008 }
 0x6ff   :  { %v1007_v13 = vpop.permute.xlu1 %1006 }
 0x705   :  { %v3232_v0 = vpop.eup %3231 }
 0x706   :  { %v869_v1 = vsel %vm253_vm2, %v3232_v0, 0.0 }
 0x707   :  { %v3234_v63 = vpop.eup %3233  ;;  %870 = vadd.xlane.f32.xlu0 %v869_v1 }
 0x708   :  { %v866_v3 = vsel %vm253_vm2, %v3234_v63, 0.0 }
 0x70b   :  { %867 = vadd.xlane.f32.xlu0 %v866_v3 }
 0x721   :  { %876 = vrot.lane.b32.xlu0 %v3481_v10, %s3393_s25 }
 0x725   :  { %965 = vrot.lane.b32.xlu0 %v3557_v20, %s3381_s22 }
 0x729   :  { %967 = vrot.lane.b32.xlu0 %v3555_v18, %s3381_s22 }
 0x72d   :  { %975 = vrot.lane.b32.xlu0 %v3024_v49, %s3395_s27 }
 0x731   :  { %1002 = vrot.lane.b32.xlu0 %v3466_v4, %s3394_s26  ;;  %v1005_v4 = vpop.permute.xlu1 %1004 }
 0x735   :  { %v974_v26 = vpop.permute.xlu1 %973 }
 0x790   :  { %v871_v6 = vpop.xlane.xlu0 %870 }
 0x791   :  { %3235 = vrcp.f32 %v871_v6 }
 0x794   :  { %v868_v7 = vpop.xlane.xlu0 %867 }
 0x795   :  { %3237 = vrcp.f32 %v868_v7 }
 0x798   :  { %v877_v9 = vpop.permute.xlu0 %876 }
 0x799   :  { %3034 = vmatprep.subr.mxu0 %v877_v9 }
 0x79a   :  { %3035 = vmatpush3.msra.mxu0 %v877_v9 }
 0x79b   :  { %3039 = vmatprep.subr.mxu0 %v1009_v11 }
 0x79c   :  { %v966_v18 = vpop.permute.xlu0 %965 }
 0x79d   :  { %v987_v27 = vsel %vm169_vm1, %v3553_v16, %v966_v18  ;;  %v2797_v16 = vld [vmem:[%s3962_s4 + $0x1] ss:$0 sm:$0xff] }
 0x79e   :  { %v3236_v10 = vpop.eup %3235  ;;  %v989_v29 = vsel %vm253_vm2, %v987_v27, %v974_v26  ;;  %v64_v26 = vld [vmem:[%s3961_s3 + $0x18] sm:$0xff]  ;;  %v63_v27 = vld [vmem:[%s3961_s3 + $0x10] sm:$0xff] }
 0x79f   :  { %v875_v20 = vmul.f32 %v3236_v10, %v3232_v0 }
 0x7a0   :  { %v968_v21 = vpop.permute.xlu0 %967 }
 0x7a1   :  { %v988_v31 = vsel %vm169_vm1, %v3551_v15, %v968_v21 }
 0x7a2   :  { %v3238_v12 = vpop.eup %3237 }
 0x7a3   :  { %v874_v14 = vmul.f32 %v3238_v12, %v3234_v63 }
 0x7a4   :  { %v976_v22 = vpop.permute.xlu0 %975 }
 0x7a5   :  { %3036 = vmatprep.mubr.msk.f32.mxu0 %vm253_vm2, %v874_v14  ;;  %v990_v32 = vsel %vm253_vm2, %v988_v31, %v976_v22 }
 0x7a6   :  { %3037 = vmatmul.mubr.msk.f32.vlgmr.msra.gmra.mxu0 %vm253_vm2, %v875_v20 }
 0x7a7   :  { %3040 = vmatpush3.msra.mxu0 %v1009_v11 }
 0x7a8   :  { %3041 = vmatprep.subr.mxu0 %v1007_v13  ;;  %v1003_v23 = vpop.permute.xlu0 %1002 }
 0x7a9   :  { %3042 = vmatpush3.msra.mxu0 %v1007_v13  ;;  %v2800_v13 = vld [vmem:[%s3962_s4 + $0x2] ss:$0 sm:$0xff] }
 0x7aa   :  { %3043 = vmatprep.subr.mxu0 %v1005_v4 }
 0x7ab   :  { %3044 = vmatpush3.msra.mxu0 %v1005_v4  ;;  %v2801_v4 = vld [vmem:[%s3962_s4 + $0x3] ss:$0 sm:$0xff] }
 0x7ac   :  { %3045 = vmatprep.subr.mxu0 %v1003_v23 }
 0x7ad   :  { %3046 = vmatpush3.msra.mxu0 %v1003_v23 }
 0x7ae   :  { %3061 = vmatprep.subr.mxu0 %v68_v54 }
 0x866   :  { %v3038_v24 = vpop.f32.mrf.mxu0 }
 0x868   :  { %v954_v25 = vpop.f32.mrf.mxu0 }
 0x869   :  { %981 = vrot.lane.b32.xlu1 %v954_v25, %s3396_s28 }
 0x86d   :  { %983 = vrot.lane.b32.xlu1 %v3038_v24, %s3396_s28 }
 0x8db   :  { %v982_v28 = vpop.permute.xlu1 %981 }
 0x8dc   :  { %v992_v30 = vsel %vm991_vm3, %v989_v29, %v982_v28  ;;  %v62_v28 = vld [vmem:[%s3961_s3 + $0x8] sm:$0xff]  ;;  %v61_v29 = vld [vmem:[%s3961_s3] sm:$0xff] }
 0x8dd   :  { %3047 = vmatprep.mubr.msk.f32.mxu0 %vm81_vm0, %v992_v30  ;;  %v2802_v30 = vld [vmem:[%s3962_s4 + $0x4] ss:$0 sm:$0xff] }
 0x8df   :  { %v984_v33 = vpop.permute.xlu1 %983 }
 0x8e0   :  { %v993_v34 = vsel %vm991_vm3, %v990_v32, %v984_v33 }
 0x8e1   :  { %3048 = vmatmul.mubr.msk.f32.vlgmr.msra.gmra.mxu0 %vm81_vm0, %v993_v34 }
 0x8e2   :  { %3062 = vmatpush3.msra.mxu0 %v68_v54  ;;  %v3703_v54 = vld [vmem:[%s3960_s2 + $0x50] sm:$0xff] }
 0x8e3   :  { %3063 = vmatprep.subr.mxu0 %v67_v55 }
 0x8e4   :  { %3064 = vmatpush3.msra.mxu0 %v67_v55  ;;  %v3710_v55 = vld [vmem:[%s3960_s2 + $0x40] sm:$0xff] }
 0x8e5   :  { %3065 = vmatprep.subr.mxu0 %v66_v56 }
 0x8e6   :  { %3066 = vmatpush3.msra.mxu0 %v66_v56 }
 0x8e7   :  { %3067 = vmatprep.subr.mxu0 %v65_v57 }
 0x8e8   :  { %3068 = vmatpush3.msra.mxu0 %v65_v57 }
 0x8e9   :  { %3069 = vmatprep.subr.mxu0 %v64_v26 }
 0x8ea   :  { %3070 = vmatpush3.msra.mxu0 %v64_v26 }
 0x8eb   :  { %3071 = vmatprep.subr.mxu0 %v63_v27 }
 0x8ec   :  { %3072 = vmatpush3.msra.mxu0 %v63_v27 }
 0x8ed   :  { %3073 = vmatprep.subr.mxu0 %v62_v28 }
 0x8ee   :  { %3074 = vmatpush3.msra.mxu0 %v62_v28 }
 0x8ef   :  { %3075 = vmatprep.subr.mxu0 %v61_v29 }
 0x8f0   :  { %3076 = vmatpush3.msra.mxu0 %v61_v29 }
 0x9a1   :  { %v3049_v35 = vpop.f32.mrf.mxu0 }
 0x9a2   :  { %v1092_v36 = vadd.f32 %v3049_v35, %v2797_v16 }
 0x9a3   :  { %v1086_v37 = vpop.f32.mrf.mxu0 }
 0x9a4   :  { %v1087_v38 = vadd.f32 %v2797_v16, %v1086_v37  ;;  %v1096_v39 = vadd.f32 %v1092_v36, %v3470_v5  ;;  %v2805_v36 = vld [vmem:[%s3962_s4 + $0x5] ss:$0 sm:$0xff] }
 0x9a6   :  { %v1100_v40 = vsel %vm81_vm0, %v1096_v39, 0.0  ;;  %v1095_v15 = vadd.f32 %v1087_v38, %v3451_v2  ;;  %v60_v2 = vld [vmem:[%s3960_s2 + $0x38] sm:$0xff] }
 0x9a7   :  { %1101 = vadd.xlane.f32.xlu1 %v1100_v40  ;;  %3050 = vmatprep.subr.mxu1 %v60_v2 }
 0x9a8   :  { %v1097_v41 = vsel %vm81_vm0, %v1095_v15, 0.0  ;;  %3051 = vmatpush3.msra.mxu1 %v60_v2 }
 0x9a9   :  { %1098 = vadd.xlane.f32.xlu0 %v1097_v41  ;;  %3052 = vmatprep.subr.mxu1 %v59_v51 }
 0x9aa   :  { %3053 = vmatpush3.msra.mxu1 %v59_v51 }
 0x9ab   :  { %3054 = vmatprep.subr.mxu1 %v58_v52 }
 0x9ac   :  { %3055 = vmatpush3.msra.mxu1 %v58_v52  ;;  %v3691_v52 = vld [vmem:[%s3960_s2 + $0x70] sm:$0xff] }
 0x9ad   :  { %3056 = vmatprep.subr.mxu1 %v57_v53 }
 0x9ae   :  { %3057 = vmatpush3.msra.mxu1 %v57_v53  ;;  %v3696_v53 = vld [vmem:[%s3960_s2 + $0x60] sm:$0xff] }
 0x9af   :  { %3080 = vmatprep.subr.mxu1 %v3691_v52 }
 0xa30   :  { %v1102_v42 = vpop.xlane.xlu1 %1101 }
 0xa31   :  { %v1105_v43 = vmul.f32 0.03125, %v1102_v42 }
 0xa32   :  { %v1099_v44 = vpop.xlane.xlu0 %1098 }
 0xa33   :  { %v1104_v45 = vmul.f32 0.03125, %v1099_v44  ;;  %v1107_v46 = vsub.f32 %v1096_v39, %v1105_v43 }
 0xa35   :  { %v1106_v47 = vsub.f32 %v1095_v15, %v1104_v45  ;;  %v1109_v50 = vmul.f32 %v1107_v46, %v1107_v46  ;;  %v1142_v21 = vmul.f32 %v2800_v13, %v1107_v46 }
 0xa37   :  { %v1108_v48 = vmul.f32 %v1106_v47, %v1106_v47  ;;  %v1113_v5 = vsel %vm81_vm0, %v1109_v50, 0.0  ;;  %v1141_v14 = vmul.f32 %v2800_v13, %v1106_v47 }
 0xa39   :  { %v1110_v49 = vsel %vm81_vm0, %v1108_v48, 0.0 }
 0xa3a   :  { %1111 = vadd.xlane.f32.xlu0 %v1110_v49 }
 0xa3e   :  { %1114 = vadd.xlane.f32.xlu0 %v1113_v5 }
 0xac3   :  { %v1112_v58 = vpop.xlane.xlu0 %1111 }
 0xac4   :  { %v1117_v59 = vmul.f32 0.032258064, %v1112_v58 }
 0xac6   :  { %3239 = vrsqrt.f32 %v1117_v59  ;;  %vm1121_vm4 = vcmp.eq.f32.partialorder %v1117_v59, inf  ;;  %v1124_v0 = vand.u32 2147483648, %v1117_v59  ;;  %vm1123_vm5 = vcmp.eq.f32.partialorder %v1117_v59, 0.0 }
 0xac7   :  { %v1115_v60 = vpop.xlane.xlu0 %1114 }
 0xac8   :  { %v1118_v61 = vmul.f32 0.032258064, %v1115_v60 }
 0xaca   :  { %3241 = vrsqrt.f32 %v1118_v61  ;;  %vm1128_vm6 = vcmp.eq.f32.partialorder %v1118_v61, inf  ;;  %v1131_v9 = vand.u32 2147483648, %v1118_v61  ;;  %vm1130_vm7 = vcmp.eq.f32.partialorder %v1118_v61, 0.0 }
 0xad3   :  { %v3240_v62 = vpop.eup %3239 }
 0xad4   :  { %v1120_v8 = vmul.f32 %v3240_v62, %v1117_v59 }
 0xad6   :  { %v1122_v1 = vsel %vm1121_vm4, %v1117_v59, %v1120_v8 }
 0xad7   :  { %v3242_v63 = vpop.eup %3241  ;;  %v1125_v3 = vsel %vm1123_vm5, %v1124_v0, %v1122_v1 }
 0xad8   :  { %v1133_v6 = vadd.f32 1e-06, %v1125_v3  ;;  %v1127_v7 = vmul.f32 %v3242_v63, %v1118_v61 }
 0xada   :  { %3243 = vrcp.f32 %v1133_v6  ;;  %v1129_v11 = vsel %vm1128_vm6, %v1118_v61, %v1127_v7 }
 0xadb   :  { %v1132_v10 = vsel %vm1130_vm7, %v1131_v9, %v1129_v11 }
 0xadc   :  { %v1134_v12 = vadd.f32 1e-06, %v1132_v10  ;;  %v2808_v10 = vld [vmem:[%s3962_s4 + $0x6] ss:$0 sm:$0xff] }
 0xade   :  { %3245 = vrcp.f32 %v1134_v12 }
 0xae7   :  { %v3244_v20 = vpop.eup %3243 }
 0xae8   :  { %v1143_v18 = vmul.f32 %v3244_v20, %v1141_v14 }
 0xaea   :  { %v1149_v22 = vadd.f32 %v2801_v4, %v1143_v18  ;;  %v2809_v18 = vld [vmem:[%s3962_s4 + $0x7] ss:$0 sm:$0xff] }
 0xaeb   :  { %v3246_v23 = vpop.eup %3245 }
 0xaec   :  { %v1144_v24 = vmul.f32 %v3246_v23, %v1142_v21  ;;  %3058 = vmatprep.mubr.msk.f32.mxu1 %vm81_vm0, %v1149_v22 }
 0xaee   :  { %v1150_v25 = vadd.f32 %v2801_v4, %v1144_v24  ;;  %v2810_v24 = vld [vmem:[%s3962_s4 + $0x8] ss:$0 sm:$0xff] }
 0xaf0   :  { %3059 = vmatmul.mubr.msk.f32.vlgmr.msra.gmra.mxu1 %vm81_vm0, %v1150_v25 }
 0xaf1   :  { %3081 = vmatpush3.msra.mxu1 %v3691_v52 }
 0xaf2   :  { %3082 = vmatprep.subr.mxu1 %v3696_v53 }
 0xaf3   :  { %3083 = vmatpush3.msra.mxu1 %v3696_v53 }
 0xaf4   :  { %3084 = vmatprep.subr.mxu1 %v3703_v54 }
 0xaf5   :  { %3085 = vmatpush3.msra.mxu1 %v3703_v54 }
 0xaf6   :  { %3086 = vmatprep.subr.mxu1 %v3710_v55 }
 0xaf7   :  { %3087 = vmatpush3.msra.mxu1 %v3710_v55 }
 0xbb0   :  { %v3060_v31 = vpop.f32.mrf.mxu1 }
 0xbb1   :  { %v1233_v32 = vadd.f32 %v3060_v31, %v2802_v30 }
 0xbb2   :  { %v1227_v33 = vpop.f32.mrf.mxu1 }
 0xbb3   :  { %v1228_v34 = vadd.f32 %v2802_v30, %v1227_v33  ;;  %v1237_v35 = vmax.f32 %v1233_v32, 0.0 }
 0xbb5   :  { %v1236_v16 = vmax.f32 %v1228_v34, 0.0 }
 0xbb7   :  { %3077 = vmatprep.mubr.msk.f32.mxu0 %vm1242_vm8, %v1236_v16 }
 0xbb8   :  { %3078 = vmatmul.mubr.msk.f32.vlgmr.msra.gmra.mxu0 %vm1242_vm8, %v1237_v35 }
 0xc78   :  { %v3079_v37 = vpop.f32.mrf.mxu0 }
 0xc79   :  { %v1321_v38 = vadd.f32 %v3079_v37, %v2805_v36 }
 0xc7a   :  { %v1315_v39 = vpop.f32.mrf.mxu0 }
 0xc7b   :  { %v1316_v40 = vadd.f32 %v2805_v36, %v1315_v39  ;;  %v1325_v15 = vadd.f32 %v1321_v38, %v1150_v25 }
 0xc7d   :  { %v1329_v41 = vsel %vm81_vm0, %v1325_v15, 0.0  ;;  %v1324_v42 = vadd.f32 %v1316_v40, %v1149_v22 }
 0xc7e   :  { %1330 = vadd.xlane.f32.xlu0 %v1329_v41 }
 0xc7f   :  { %v1326_v43 = vsel %vm81_vm0, %v1324_v42, 0.0 }
 0xc80   :  { %1327 = vadd.xlane.f32.xlu1 %v1326_v43 }
 0xd07   :  { %v1331_v44 = vpop.xlane.xlu0 %1330 }
 0xd08   :  { %v1333_v45 = vmul.f32 0.03125, %v1331_v44 }
 0xd09   :  { %v1328_v46 = vpop.xlane.xlu1 %1327 }
 0xd0a   :  { %v1335_v47 = vsub.f32 %v1325_v15, %v1333_v45  ;;  %v1332_v48 = vmul.f32 0.03125, %v1328_v46 }
 0xd0c   :  { %v1334_v49 = vsub.f32 %v1324_v42, %v1332_v48  ;;  %v1337_v50 = vmul.f32 %v1335_v47, %v1335_v47  ;;  %v1369_v13 = vmul.f32 %v2808_v10, %v1335_v47 }
 0xd0e   :  { %v1341_v5 = vsel %vm81_vm0, %v1337_v50, 0.0  ;;  %v1336_v2 = vmul.f32 %v1334_v49, %v1334_v49  ;;  %v1368_v14 = vmul.f32 %v2808_v10, %v1334_v49 }
 0xd0f   :  { %1342 = vadd.xlane.f32.xlu0 %v1341_v5 }
 0xd10   :  { %v1338_v51 = vsel %vm81_vm0, %v1336_v2, 0.0 }
 0xd11   :  { %1339 = vadd.xlane.f32.xlu1 %v1338_v51 }
 0xd98   :  { %v1343_v56 = vpop.xlane.xlu0 %1342 }
 0xd99   :  { %v1345_v57 = vmul.f32 0.032258064, %v1343_v56 }
 0xd9a   :  { %v1340_v58 = vpop.xlane.xlu1 %1339 }
 0xd9b   :  { %3247 = vrsqrt.f32 %v1345_v57  ;;  %v1344_v59 = vmul.f32 0.032258064, %v1340_v58  ;;  %vm1355_vm9 = vcmp.eq.f32.partialorder %v1345_v57, inf  ;;  %v1358_v62 = vand.u32 2147483648, %v1345_v57 }
 0xd9c   :  { %vm1357_vm10 = vcmp.eq.f32.partialorder %v1345_v57, 0.0 }
 0xd9d   :  { %3249 = vrsqrt.f32 %v1344_v59  ;;  %vm1348_vm11 = vcmp.eq.f32.partialorder %v1344_v59, inf  ;;  %v1351_v6 = vand.u32 2147483648, %v1344_v59  ;;  %vm1350_vm12 = vcmp.eq.f32.partialorder %v1344_v59, 0.0 }
 0xda8   :  { %v3248_v60 = vpop.eup %3247 }
 0xda9   :  { %v1354_v61 = vmul.f32 %v3248_v60, %v1345_v57 }
 0xdaa   :  { %v3250_v8 = vpop.eup %3249 }
 0xdab   :  { %v1356_v0 = vsel %vm1355_vm9, %v1345_v57, %v1354_v61  ;;  %v1347_v63 = vmul.f32 %v3250_v8, %v1344_v59 }
 0xdac   :  { %v1359_v1 = vsel %vm1357_vm10, %v1358_v62, %v1356_v0 }
 0xdad   :  { %v1361_v3 = vadd.f32 1e-06, %v1359_v1  ;;  %v1349_v7 = vsel %vm1348_vm11, %v1344_v59, %v1347_v63 }
 0xdae   :  { %v1352_v9 = vsel %vm1350_vm12, %v1351_v6, %v1349_v7 }
 0xdaf   :  { %3251 = vrcp.f32 %v1361_v3  ;;  %v1360_v11 = vadd.f32 1e-06, %v1352_v9 }
 0xdb1   :  { %3253 = vrcp.f32 %v1360_v11 }
 0xdbc   :  { %v3252_v12 = vpop.eup %3251 }
 0xdbd   :  { %v1371_v4 = vmul.f32 %v3252_v12, %v1369_v13 }
 0xdbe   :  { %v3254_v20 = vpop.eup %3253 }
 0xdbf   :  { %v1370_v21 = vmul.f32 %v3254_v20, %v1368_v14  ;;  %v3724_v23 = vadd.f32 %v2809_v18, %v1371_v4 }
 0xdc1   :  { %v3722_v22 = vadd.f32 %v2809_v18, %v1370_v21 }
 0xdc3   :  { %3088 = vmatprep.mubr.msk.f32.mxu1 %vm81_vm0, %v3722_v22 }
 0xdc4   :  { %3089 = vmatmul.mubr.msk.f32.vlgmr.msra.gmra.mxu1 %vm81_vm0, %v3724_v23 }
 0xe84   :  { %v3090_v25 = vpop.f32.mrf.mxu1 }
 0xe85   :  { %v3733_v26 = vadd.f32 %v3090_v25, %v2810_v24 }
 0xe86   :  { %v1478_v27 = vpop.f32.mrf.mxu1 }
 0xe87   :  { %v3735_v28 = vadd.f32 %v2810_v24, %v1478_v27  ;;  %1491 = vrot.lane.b32.xlu1 %v3733_v26, %s3384_s14 }
 0xe89   :  { %1489 = vrot.lane.b32.xlu0 %v3735_v28, %s3384_s14  ;;  %3095 = vmatprep.mubr.msk.f32.mxu1 %vm169_vm1, %v3735_v28 }
 0xe8b   :  { %1691 = vrot.lane.b32.xlu1 %v3733_v26, %s3383_s13 }
 0xe8d   :  { %1685 = vrot.lane.b32.xlu0 %v3735_v28, %s3385_s15 }
 0xe8f   :  { %1689 = vrot.lane.b32.xlu1 %v3735_v28, %s3383_s13 }
 0xe93   :  { %1687 = vrot.lane.b32.xlu1 %v3733_v26, %s3385_s15 }
 0xef9   :  { %v1492_v29 = vpop.permute.xlu1 %1491 }
 0xefa   :  { %3091 = vmatprep.subr.msk.mxu1 %vm169_vm1, %v1492_v29 }
 0xefb   :  { %3092 = vmatpush3.xpose.msk.msra.mxu1 %vm169_vm1, %v1492_v29  ;;  %v1490_v30 = vpop.permute.xlu0 %1489 }
 0xefc   :  { %3093 = vmatprep.subr.msk.mxu1 %vm169_vm1, %v1490_v30 }
 0xefd   :  { %v1692_v31 = vpop.permute.xlu1 %1691 }
 0xeff   :  { %3094 = vmatpush3.xpose.msk.msra.mxu1 %vm169_vm1, %v1490_v30  ;;  %v1686_v32 = vpop.permute.xlu0 %1685 }
 0xf00   :  { %3105 = vmatprep.subr.msk.mxu1 %vm169_vm1, %v1692_v31 }
 0xf01   :  { %v1690_v33 = vpop.permute.xlu1 %1689 }
 0xf02   :  { %3096 = vmatmul.mubr.msk.f32.vlgmr.msra.gmra.mxu1 %vm169_vm1, %v3733_v26 }
 0xf03   :  { %3106 = vmatpush3.xpose.msk.msra.mxu1 %vm169_vm1, %v1692_v31  ;;  %3109 = vmatprep.mubr.msk.f32.mxu1 %vm169_vm1, %v1686_v32 }
 0xf04   :  { %3107 = vmatprep.subr.msk.mxu1 %vm169_vm1, %v1690_v33 }
 0xf05   :  { %v1688_v34 = vpop.permute.xlu1 %1687 }
 0xf07   :  { %3108 = vmatpush3.xpose.msk.msra.mxu1 %vm169_vm1, %v1690_v33 }
 0xf0a   :  { %3110 = vmatmul.mubr.msk.f32.vlgmr.msra.gmra.mxu1 %vm169_vm1, %v1688_v34 }
 0xfc2   :  { %v3097_v16 = vpop.f32.mrf.mxu1 }
 0xfc3   :  { %v1573_v35 = vadd.f32 %v3097_v16, %v3509_v17 }
 0xfc4   :  { %v1567_v36 = vpop.f32.mrf.mxu1 }
 0xfc5   :  { %v1568_v37 = vadd.f32 %v1567_v36, %v3511_v19  ;;  %v1579_v38 = vsel %vm253_vm2, %v1573_v35, -inf }
 0xfc6   :  { %1580 = vmax.xlane.f32.xlu1 %v1579_v38  ;;  %v3312_v38 = vld [vmem:[#allocation5] sm:$0xff] }
 0xfc7   :  { %v1576_v39 = vsel %vm253_vm2, %v1568_v37, -inf }
 0xfc8   :  { %1577 = vmax.xlane.f32.xlu0 %v1576_v39 }
 0xfca   :  { %v3111_v40 = vpop.f32.mrf.mxu1 }
 0xfcb   :  { %v1773_v42 = vadd.f32 %v3111_v40, %v3509_v17 }
 0xfcc   :  { %v1767_v15 = vpop.f32.mrf.mxu1 }
 0xfcd   :  { %v1768_v41 = vadd.f32 %v1767_v15, %v3511_v19  ;;  %v1779_v44 = vsel %vm253_vm2, %v1773_v42, -inf }
 0xfcf   :  { %v1776_v43 = vsel %vm253_vm2, %v1768_v41, -inf }
 0xfd0   :  { %1777 = vmax.xlane.f32.xlu0 %v1776_v43 }
 0xfd4   :  { %1780 = vmax.xlane.f32.xlu0 %v1779_v44 }
 0xfd7   :  { %1600 = vrot.lane.b32.xlu1 %v3733_v26, %s3386_s16 }
 0xfdb   :  { %1800 = vrot.lane.b32.xlu1 %v3733_v26, %s3387_s17 }
 0xfdf   :  { %1798 = vrot.lane.b32.xlu1 %v3735_v28, %s3387_s17 }
 0xfea   :  { %1598 = vrot.lane.b32.xlu0 %v3735_v28, %s3386_s16 }
0x104f   :  { %v1581_v19 = vpop.xlane.xlu1 %1580 }
0x1050   :  { %v1583_v17 = vsub.f32 %v1573_v35, %v1581_v19  ;;  %v3311_v35 = vld [vmem:[#allocation5 + $0x8] sm:$0xff] }
0x1051   :  { %v1578_v45 = vpop.xlane.xlu0 %1577 }
0x1052   :  { %v1586_v46 = vmul.f32 1.442695, %v1583_v17  ;;  %v1582_v47 = vsub.f32 %v1568_v37, %v1578_v45 }
0x1053   :  { %v1601_v48 = vpop.permute.xlu1 %1600 }
0x1054   :  { %3255 = vpow2.f32 %v1586_v46  ;;  %v1584_v49 = vmul.f32 1.442695, %v1582_v47  ;;  %3098 = vmatprep.subr.mxu0 %v1601_v48 }
0x1055   :  { %3099 = vmatpush3.msra.mxu0 %v1601_v48 }
0x1056   :  { %3257 = vpow2.f32 %v1584_v49 }
0x1057   :  { %v1801_v60 = vpop.permute.xlu1 %1800 }
0x1059   :  { %v1778_v50 = vpop.xlane.xlu0 %1777 }
0x105a   :  { %v1782_v0 = vsub.f32 %v1768_v41, %v1778_v50 }
0x105b   :  { %v1799_v6 = vpop.permute.xlu1 %1798 }
0x105c   :  { %v1784_v1 = vmul.f32 1.442695, %v1782_v0 }
0x105d   :  { %v1781_v5 = vpop.xlane.xlu0 %1780 }
0x105e   :  { %v1783_v2 = vsub.f32 %v1773_v42, %v1781_v5 }
0x1060   :  { %v1786_v51 = vmul.f32 1.442695, %v1783_v2 }
0x1061   :  { %v3256_v56 = vpop.eup %3255  ;;  %v1599_v57 = vpop.permute.xlu0 %1598 }
0x1062   :  { %3259 = vpow2.f32 %v1786_v51  ;;  %3100 = vmatprep.subr.mxu0 %v1599_v57  ;;  %v1591_v58 = vsel %vm253_vm2, %v3256_v56, 0.0 }
0x1063   :  { %v3258_v59 = vpop.eup %3257  ;;  %1592 = vadd.xlane.f32.xlu0 %v1591_v58  ;;  %3101 = vmatpush3.msra.mxu0 %v1599_v57  ;;  %3261 = vpow2.f32 %v1784_v1 }
0x1064   :  { %3112 = vmatprep.subr.mxu0 %v1801_v60  ;;  %v1588_v61 = vsel %vm253_vm2, %v3258_v59, 0.0 }
0x1065   :  { %1589 = vadd.xlane.f32.xlu1 %v1588_v61 }
0x106f   :  { %v3260_v62 = vpop.eup %3259 }
0x1070   :  { %v1791_v8 = vsel %vm253_vm2, %v3260_v62, 0.0  ;;  %v3262_v63 = vpop.eup %3261 }
0x1071   :  { %1792 = vadd.xlane.f32.xlu0 %v1791_v8  ;;  %v1788_v3 = vsel %vm253_vm2, %v3262_v63, 0.0 }
0x1076   :  { %1889 = vrot.lane.b32.xlu1 %v3735_v28, %s3388_s18 }
0x1087   :  { %1891 = vrot.lane.b32.xlu0 %v3733_v26, %s3388_s18 }
0x108b   :  { %1885 = vrot.lane.b32.xlu0 %v3735_v28, %s3389_s19 }
0x109a   :  { %1789 = vadd.xlane.f32.xlu1 %v1788_v3 }
0x10ab   :  { %1887 = vrot.lane.b32.xlu1 %v3733_v26, %s3389_s19 }
0x10ec   :  { %v1593_v7 = vpop.xlane.xlu0 %1592 }
0x10ed   :  { %3263 = vrcp.f32 %v1593_v7 }
0x10ee   :  { %v1590_v9 = vpop.xlane.xlu1 %1589 }
0x10ef   :  { %3265 = vrcp.f32 %v1590_v9 }
0x10f2   :  { %v1890_v4 = vpop.permute.xlu1 %1889 }
0x10fa   :  { %v3264_v11 = vpop.eup %3263  ;;  %v1793_v12 = vpop.xlane.xlu0 %1792 }
0x10fb   :  { %v1597_v14 = vmul.f32 %v3264_v11, %v3256_v56  ;;  %3267 = vrcp.f32 %v1793_v12 }
0x10fc   :  { %v3266_v10 = vpop.eup %3265 }
0x10fd   :  { %v1596_v13 = vmul.f32 %v3266_v10, %v3258_v59 }
0x10fe   :  { %v1892_v20 = vpop.permute.xlu0 %1891 }
0x10ff   :  { %3102 = vmatprep.mubr.msk.f32.mxu0 %vm253_vm2, %v1596_v13 }
0x1100   :  { %3103 = vmatmul.mubr.msk.f32.vlgmr.msra.gmra.mxu0 %vm253_vm2, %v1597_v14 }
0x1101   :  { %3113 = vmatpush3.msra.mxu0 %v1801_v60 }
0x1102   :  { %3114 = vmatprep.subr.mxu0 %v1799_v6  ;;  %v1886_v29 = vpop.permute.xlu0 %1885 }
0x1103   :  { %3115 = vmatpush3.msra.mxu0 %v1799_v6 }
0x1104   :  { %3119 = vmatprep.subr.msk.mxu0 %vm169_vm1, %v1892_v20 }
0x1108   :  { %v3268_v21 = vpop.eup %3267 }
0x1109   :  { %v1797_v27 = vmul.f32 %v3268_v21, %v3260_v62 }
0x1123   :  { %v1790_v18 = vpop.xlane.xlu1 %1789 }
0x1124   :  { %3269 = vrcp.f32 %v1790_v18 }
0x1127   :  { %v1888_v30 = vpop.permute.xlu1 %1887 }
0x1131   :  { %v3270_v24 = vpop.eup %3269 }
0x1132   :  { %v1796_v25 = vmul.f32 %v3270_v24, %v3262_v63 }
0x1134   :  { %3116 = vmatprep.mubr.msk.f32.mxu0 %vm253_vm2, %v1796_v25 }
0x1135   :  { %3117 = vmatmul.mubr.msk.f32.vlgmr.msra.gmra.mxu0 %vm253_vm2, %v1797_v27 }
0x1136   :  { %3120 = vmatpush3.xpose.msk.msra.mxu0 %vm169_vm1, %v1892_v20  ;;  %3123 = vmatprep.mubr.msk.f32.mxu0 %vm169_vm1, %v1886_v29 }
0x1137   :  { %3121 = vmatprep.subr.msk.mxu0 %vm169_vm1, %v1890_v4 }
0x113a   :  { %3122 = vmatpush3.xpose.msk.msra.mxu0 %vm169_vm1, %v1890_v4 }
0x113d   :  { %3124 = vmatmul.mubr.msk.f32.vlgmr.msra.gmra.mxu0 %vm169_vm1, %v1888_v30 }
0x11c0   :  { %v3801_v31 = vpop.f32.mrf.mxu0 }
0x11c2   :  { %v3803_v32 = vpop.f32.mrf.mxu0 }
0x11f5   :  { %v3805_v33 = vpop.f32.mrf.mxu0 }
0x11f7   :  { %v3807_v34 = vpop.f32.mrf.mxu0 }
0x11fd   :  { %v3125_v16 = vpop.f32.mrf.mxu0 }
0x11fe   :  { %v1973_v36 = vadd.f32 %v3311_v35, %v3125_v16 }
0x11ff   :  { %v1967_v37 = vpop.f32.mrf.mxu0 }
0x1200   :  { %v1968_v39 = vadd.f32 %v3312_v38, %v1967_v37  ;;  %v1979_v40 = vsel %vm253_vm2, %v1973_v36, -inf }
0x1201   :  { %1980 = vmax.xlane.f32.xlu1 %v1979_v40 }
0x1202   :  { %v1976_v15 = vsel %vm253_vm2, %v1968_v39, -inf }
0x1203   :  { %1977 = vmax.xlane.f32.xlu0 %v1976_v15 }
0x1212   :  { %2000 = vrot.lane.b32.xlu1 %v3733_v26, %s3390_s20 }
0x1216   :  { %2091 = vrot.lane.b32.xlu1 %v3733_v26, %s3391_s23 }
0x121a   :  { %2089 = vrot.lane.b32.xlu1 %v3735_v28, %s3391_s23 }
0x121e   :  { %2087 = vrot.lane.b32.xlu1 %v3733_v26, %s3392_s24 }
0x128a   :  { %v1981_v41 = vpop.xlane.xlu1 %1980 }
0x128b   :  { %v1983_v42 = vsub.f32 %v1973_v36, %v1981_v41 }
0x128c   :  { %v1978_v43 = vpop.xlane.xlu0 %1977 }
0x128d   :  { %v1986_v44 = vmul.f32 1.442695, %v1983_v42  ;;  %v1982_v19 = vsub.f32 %v1968_v39, %v1978_v43 }
0x128e   :  { %v2001_v17 = vpop.permute.xlu1 %2000 }
0x128f   :  { %3271 = vpow2.f32 %v1986_v44  ;;  %v1984_v45 = vmul.f32 1.442695, %v1982_v19  ;;  %3126 = vmatprep.subr.mxu1 %v2001_v17 }
0x1290   :  { %3127 = vmatpush3.msra.mxu1 %v2001_v17 }
0x1291   :  { %3273 = vpow2.f32 %v1984_v45 }
0x1292   :  { %v2092_v51 = vpop.permute.xlu1 %2091 }
0x1296   :  { %v2090_v61 = vpop.permute.xlu1 %2089 }
0x129a   :  { %v2088_v62 = vpop.permute.xlu1 %2087 }
0x129c   :  { %v3272_v46 = vpop.eup %3271 }
0x129d   :  { %v1991_v47 = vsel %vm253_vm2, %v3272_v46, 0.0 }
0x129e   :  { %v3274_v48 = vpop.eup %3273  ;;  %1992 = vadd.xlane.f32.xlu0 %v1991_v47 }
0x129f   :  { %v1988_v49 = vsel %vm253_vm2, %v3274_v48, 0.0 }
0x12a2   :  { %1989 = vadd.xlane.f32.xlu0 %v1988_v49 }
0x12b8   :  { %1998 = vrot.lane.b32.xlu0 %v3735_v28, %s3390_s20 }
0x12bc   :  { %2085 = vrot.lane.b32.xlu0 %v3735_v28, %s3392_s24 }
0x1327   :  { %v1993_v50 = vpop.xlane.xlu0 %1992 }
0x1328   :  { %3275 = vrcp.f32 %v1993_v50 }
0x132b   :  { %v1990_v5 = vpop.xlane.xlu0 %1989 }
0x132c   :  { %3277 = vrcp.f32 %v1990_v5 }
0x132f   :  { %v1999_v2 = vpop.permute.xlu0 %1998 }
0x1330   :  { %3128 = vmatprep.subr.mxu1 %v1999_v2 }
0x1331   :  { %3129 = vmatpush3.msra.mxu1 %v1999_v2 }
0x1332   :  { %3133 = vmatprep.subr.msk.mxu1 %vm169_vm1, %v2092_v51 }
0x1333   :  { %v2086_v60 = vpop.permute.xlu0 %2085 }
0x1335   :  { %v3276_v56 = vpop.eup %3275 }
0x1336   :  { %v1997_v59 = vmul.f32 %v3276_v56, %v3272_v46 }
0x1339   :  { %v3278_v57 = vpop.eup %3277 }
0x133a   :  { %v1996_v58 = vmul.f32 %v3278_v57, %v3274_v48 }
0x133c   :  { %3130 = vmatprep.mubr.msk.f32.mxu1 %vm253_vm2, %v1996_v58 }
0x133d   :  { %3131 = vmatmul.mubr.msk.f32.vlgmr.msra.gmra.mxu1 %vm253_vm2, %v1997_v59 }
0x133e   :  { %3134 = vmatpush3.xpose.msk.msra.mxu1 %vm169_vm1, %v2092_v51  ;;  %3137 = vmatprep.mubr.msk.f32.mxu1 %vm169_vm1, %v2086_v60 }
0x133f   :  { %3135 = vmatprep.subr.msk.mxu1 %vm169_vm1, %v2090_v61 }
0x1342   :  { %3136 = vmatpush3.xpose.msk.msra.mxu1 %vm169_vm1, %v2090_v61 }
0x1345   :  { %3138 = vmatmul.mubr.msk.f32.vlgmr.msra.gmra.mxu1 %vm169_vm1, %v2088_v62 }
0x13fd   :  { %v3132_v8 = vpop.f32.mrf.mxu1 }
0x13ff   :  { %v2076_v0 = vpop.f32.mrf.mxu1 }
0x1405   :  { %v3139_v1 = vpop.f32.mrf.mxu1 }
0x1406   :  { %v2173_v63 = vadd.f32 %v3311_v35, %v3139_v1  ;;  %v1382_v1 = vld [vmem:[%s3960_s2 + $0x48] sm:$0xff] }
0x1407   :  { %v2167_v3 = vpop.f32.mrf.mxu1 }
0x1408   :  { %v2168_v6 = vadd.f32 %v3312_v38, %v2167_v3  ;;  %v2179_v7 = vsel %vm253_vm2, %v2173_v63, -inf  ;;  %v1392_v3 = vld [vmem:[%s3961_s3 + $0x70] sm:$0xff] }
0x1409   :  { %2180 = vmax.xlane.f32.xlu1 %v2179_v7  ;;  %v1390_v7 = vld [vmem:[%s3961_s3 + $0x60] sm:$0xff] }
0x140a   :  { %v2176_v9 = vsel %vm253_vm2, %v2168_v6, -inf }
0x140b   :  { %2177 = vmax.xlane.f32.xlu0 %v2176_v9 }
0x141a   :  { %2200 = vrot.lane.b32.xlu1 %v3733_v26, %s3393_s25 }
0x141e   :  { %2329 = vrot.lane.b32.xlu1 %v3691_v52, %s3394_s26 }
0x1422   :  { %2327 = vrot.lane.b32.xlu1 %v3696_v53, %s3394_s26 }
0x1426   :  { %2325 = vrot.lane.b32.xlu1 %v3703_v54, %s3394_s26 }
0x142a   :  { %2295 = vrot.lane.b32.xlu1 %v2076_v0, %s3395_s27  ;;  %v1383_v0 = vld [vmem:[%s3960_s2 + $0x58] sm:$0xff] }
0x1492   :  { %v2181_v11 = vpop.xlane.xlu1 %2180 }
0x1493   :  { %v2183_v10 = vsub.f32 %v2173_v63, %v2181_v11  ;;  %v1393_v63 = vld [vmem:[%s3961_s3 + $0x78] sm:$0xff] }
0x1494   :  { %v2178_v12 = vpop.xlane.xlu0 %2177 }
0x1495   :  { %v2186_v13 = vmul.f32 1.442695, %v2183_v10  ;;  %v2182_v14 = vsub.f32 %v2168_v6, %v2178_v12  ;;  %v1391_v6 = vld [vmem:[%s3961_s3 + $0x68] sm:$0xff] }
0x1496   :  { %v2201_v20 = vpop.permute.xlu1 %2200 }
0x1497   :  { %3279 = vpow2.f32 %v2186_v13  ;;  %v2184_v4 = vmul.f32 1.442695, %v2182_v14  ;;  %3140 = vmatprep.subr.mxu0 %v2201_v20 }
0x1498   :  { %3141 = vmatpush3.msra.mxu0 %v2201_v20 }
0x1499   :  { %3281 = vpow2.f32 %v2184_v4 }
0x149a   :  { %v2330_v25 = vpop.permute.xlu1 %2329 }
0x149e   :  { %v2328_v29 = vpop.permute.xlu1 %2327 }
0x14a4   :  { %v3280_v52 = vpop.eup %3279 }
0x14a5   :  { %v2191_v26 = vsel %vm253_vm2, %v3280_v52, 0.0 }
0x14a6   :  { %v3282_v53 = vpop.eup %3281  ;;  %2192 = vadd.xlane.f32.xlu0 %v2191_v26 }
0x14a7   :  { %v2188_v54 = vsel %vm253_vm2, %v3282_v53, 0.0 }
0x14aa   :  { %2189 = vadd.xlane.f32.xlu0 %v2188_v54 }
0x14c0   :  { %2198 = vrot.lane.b32.xlu0 %v3735_v28, %s3393_s25 }
0x14c4   :  { %2287 = vrot.lane.b32.xlu0 %v3807_v34, %s3381_s22 }
0x14c8   :  { %2289 = vrot.lane.b32.xlu0 %v3805_v33, %s3381_s22 }
0x14cc   :  { %2297 = vrot.lane.b32.xlu0 %v3132_v8, %s3395_s27  ;;  %v1384_v8 = vld [vmem:[%s3960_s2 + $0x68] sm:$0xff] }
0x14d0   :  { %2323 = vrot.lane.b32.xlu0 %v3710_v55, %s3394_s26  ;;  %v2326_v55 = vpop.permute.xlu1 %2325 }
0x14d4   :  { %v2296_v39 = vpop.permute.xlu1 %2295 }
0x152f   :  { %v2193_v18 = vpop.xlane.xlu0 %2192 }
0x1530   :  { %3283 = vrcp.f32 %v2193_v18 }
0x1533   :  { %v2190_v21 = vpop.xlane.xlu0 %2189 }
0x1534   :  { %3285 = vrcp.f32 %v2190_v21 }
0x1537   :  { %v2199_v24 = vpop.permute.xlu0 %2198 }
0x1538   :  { %3142 = vmatprep.subr.mxu0 %v2199_v24 }
0x1539   :  { %3143 = vmatpush3.msra.mxu0 %v2199_v24 }
0x153a   :  { %3147 = vmatprep.subr.mxu0 %v2330_v25 }
0x153b   :  { %v2288_v33 = vpop.permute.xlu0 %2287 }
0x153c   :  { %v2309_v40 = vsel %vm169_vm1, %v3803_v32, %v2288_v33  ;;  %v2837_v32 = vld [vmem:[%s3962_s4 + $0x9] ss:$0 sm:$0xff] }
0x153d   :  { %v3284_v28 = vpop.eup %3283  ;;  %v2311_v41 = vsel %vm253_vm2, %v2309_v40, %v2296_v39  ;;  %v1387_v39 = vld [vmem:[%s3961_s3 + $0x48] sm:$0xff]  ;;  %v1386_v40 = vld [vmem:[%s3961_s3 + $0x40] sm:$0xff] }
0x153e   :  { %v2197_v34 = vmul.f32 %v3284_v28, %v3280_v52  ;;  %v2840_v28 = vld [vmem:[%s3962_s4 + $0xa] ss:$0 sm:$0xff] }
0x153f   :  { %v2290_v16 = vpop.permute.xlu0 %2289 }
0x1540   :  { %v2310_v43 = vsel %vm169_vm1, %v3801_v31, %v2290_v16 }
0x1541   :  { %v3286_v27 = vpop.eup %3285 }
0x1542   :  { %v2196_v30 = vmul.f32 %v3286_v27, %v3282_v53 }
0x1543   :  { %v2298_v35 = vpop.permute.xlu0 %2297 }
0x1544   :  { %3144 = vmatprep.mubr.msk.f32.mxu0 %vm253_vm2, %v2196_v30  ;;  %v2312_v44 = vsel %vm253_vm2, %v2310_v43, %v2298_v35  ;;  %v2841_v30 = vld [vmem:[%s3962_s4 + $0xb] ss:$0 sm:$0xff] }
0x1545   :  { %3145 = vmatmul.mubr.msk.f32.vlgmr.msra.gmra.mxu0 %vm253_vm2, %v2197_v34 }
0x1546   :  { %3148 = vmatpush3.msra.mxu0 %v2330_v25 }
0x1547   :  { %3149 = vmatprep.subr.mxu0 %v2328_v29  ;;  %v2324_v36 = vpop.permute.xlu0 %2323 }
0x1548   :  { %3150 = vmatpush3.msra.mxu0 %v2328_v29 }
0x1549   :  { %3151 = vmatprep.subr.mxu0 %v2326_v55 }
0x154a   :  { %3152 = vmatpush3.msra.mxu0 %v2326_v55 }
0x154b   :  { %3153 = vmatprep.subr.mxu0 %v2324_v36 }
0x154c   :  { %3154 = vmatpush3.msra.mxu0 %v2324_v36 }
0x154d   :  { %3169 = vmatprep.subr.mxu0 %v1393_v63 }
0x1605   :  { %v3146_v37 = vpop.f32.mrf.mxu0 }
0x1607   :  { %v2276_v38 = vpop.f32.mrf.mxu0 }
0x1608   :  { %2303 = vrot.lane.b32.xlu1 %v2276_v38, %s3396_s28  ;;  %v1388_v38 = vld [vmem:[%s3961_s3 + $0x50] sm:$0xff] }
0x160c   :  { %2305 = vrot.lane.b32.xlu1 %v3146_v37, %s3396_s28  ;;  %v1389_v37 = vld [vmem:[%s3961_s3 + $0x58] sm:$0xff] }
0x167a   :  { %v2304_v15 = vpop.permute.xlu1 %2303 }
0x167b   :  { %v2313_v42 = vsel %vm991_vm3, %v2311_v41, %v2304_v15  ;;  %v2842_v15 = vld [vmem:[%s3962_s4 + $0xc] ss:$0 sm:$0xff] }
0x167c   :  { %3155 = vmatprep.mubr.msk.f32.mxu0 %vm81_vm0, %v2313_v42 }
0x167e   :  { %v2306_v19 = vpop.permute.xlu1 %2305 }
0x167f   :  { %v2314_v17 = vsel %vm991_vm3, %v2312_v44, %v2306_v19 }
0x1680   :  { %3156 = vmatmul.mubr.msk.f32.vlgmr.msra.gmra.mxu0 %vm81_vm0, %v2314_v17 }
0x1681   :  { %3170 = vmatpush3.msra.mxu0 %v1393_v63 }
0x1682   :  { %3171 = vmatprep.subr.mxu0 %v1392_v3 }
0x1683   :  { %3172 = vmatpush3.msra.mxu0 %v1392_v3 }
0x1684   :  { %3173 = vmatprep.subr.mxu0 %v1391_v6 }
0x1685   :  { %3174 = vmatpush3.msra.mxu0 %v1391_v6 }
0x1686   :  { %3175 = vmatprep.subr.mxu0 %v1390_v7 }
0x1687   :  { %3176 = vmatpush3.msra.mxu0 %v1390_v7 }
0x1688   :  { %3177 = vmatprep.subr.mxu0 %v1389_v37 }
0x1689   :  { %3178 = vmatpush3.msra.mxu0 %v1389_v37 }
0x168a   :  { %3179 = vmatprep.subr.mxu0 %v1388_v38 }
0x168b   :  { %3180 = vmatpush3.msra.mxu0 %v1388_v38 }
0x168c   :  { %3181 = vmatprep.subr.mxu0 %v1387_v39 }
0x168d   :  { %3182 = vmatpush3.msra.mxu0 %v1387_v39 }
0x168e   :  { %3183 = vmatprep.subr.mxu0 %v1386_v40 }
0x168f   :  { %3184 = vmatpush3.msra.mxu0 %v1386_v40 }
0x1740   :  { %v3157_v45 = vpop.f32.mrf.mxu0 }
0x1741   :  { %v2413_v46 = vadd.f32 %v3157_v45, %v2837_v32 }
0x1742   :  { %v2407_v47 = vpop.f32.mrf.mxu0 }
0x1743   :  { %v2417_v48 = vadd.f32 %v2413_v46, %v3724_v23  ;;  %v2408_v49 = vadd.f32 %v2837_v32, %v2407_v47  ;;  %v2845_v32 = vld [vmem:[%s3962_s4 + $0xd] ss:$0 sm:$0xff] }
0x1745   :  { %v2416_v50 = vadd.f32 %v2408_v49, %v3722_v22  ;;  %v2421_v31 = vsel %vm81_vm0, %v2417_v48, 0.0  ;;  %v1385_v22 = vld [vmem:[%s3960_s2 + $0x78] sm:$0xff]  ;;  %s3353_s2 = scalar_lea.vmem %s2758_s8, 256 }
0x1746   :  { %2422 = vadd.xlane.f32.xlu1 %v2421_v31  ;;  %3158 = vmatprep.subr.mxu1 %v1385_v22  ;;  %p3354_p10 = scmp.ne.s32.totalorder %s2758_s8, %s3353_s2  ;;  %p3359_p12 = scmp.lt.s32.totalorder %s3353_s2, %s3353_s2 }
0x1747   :  { %v2418_v5 = vsel %vm81_vm0, %v2416_v50, 0.0  ;;  %3159 = vmatpush3.msra.mxu1 %v1385_v22 }
0x1748   :  { %2419 = vadd.xlane.f32.xlu0 %v2418_v5  ;;  %3160 = vmatprep.subr.mxu1 %v1384_v8  ;;  %p3360_p13 = por %p3359_p12, %p3358_p11 }
0x1749   :  { %3161 = vmatpush3.msra.mxu1 %v1384_v8 }
0x174a   :  { %3162 = vmatprep.subr.mxu1 %v1383_v0  ;;  %p3361_p0 = pnand %p3360_p13, %p3354_p10 }
0x174b   :  { %3163 = vmatpush3.msra.mxu1 %v1383_v0 }
0x174c   :  { %3164 = vmatprep.subr.mxu1 %v1382_v1 }
0x174d   :  { %3165 = vmatpush3.msra.mxu1 %v1382_v1 }
0x17cf   :  { %v2423_v2 = vpop.xlane.xlu1 %2422 }
0x17d0   :  { %v2425_v51 = vmul.f32 0.03125, %v2423_v2 }
0x17d1   :  { %v2420_v56 = vpop.xlane.xlu0 %2419 }
0x17d2   :  { %v2424_v57 = vmul.f32 0.03125, %v2420_v56  ;;  %v2427_v58 = vsub.f32 %v2417_v48, %v2425_v51 }
0x17d4   :  { %v2426_v59 = vsub.f32 %v2416_v50, %v2424_v57  ;;  %v2429_v62 = vmul.f32 %v2427_v58, %v2427_v58  ;;  %v2461_v55 = vmul.f32 %v2840_v28, %v2427_v58 }
0x17d6   :  { %v2428_v60 = vmul.f32 %v2426_v59, %v2426_v59  ;;  %v2433_v23 = vsel %vm81_vm0, %v2429_v62, 0.0  ;;  %v2460_v27 = vmul.f32 %v2840_v28, %v2426_v59 }
0x17d8   :  { %v2430_v61 = vsel %vm81_vm0, %v2428_v60, 0.0 }
0x17d9   :  { %2431 = vadd.xlane.f32.xlu0 %v2430_v61 }
0x17dd   :  { %2434 = vadd.xlane.f32.xlu0 %v2433_v23 }
0x1862   :  { %v2432_v9 = vpop.xlane.xlu0 %2431 }
0x1863   :  { %v2436_v11 = vmul.f32 0.032258064, %v2432_v9 }
0x1865   :  { %3287 = vrsqrt.f32 %v2436_v11  ;;  %vm2440_vm13 = vcmp.eq.f32.partialorder %v2436_v11, inf  ;;  %v2443_v20 = vand.u32 2147483648, %v2436_v11  ;;  %vm2442_vm14 = vcmp.eq.f32.partialorder %v2436_v11, 0.0 }
0x1866   :  { %v2435_v10 = vpop.xlane.xlu0 %2434 }
0x1867   :  { %v2437_v12 = vmul.f32 0.032258064, %v2435_v10 }
0x1869   :  { %3289 = vrsqrt.f32 %v2437_v12  ;;  %vm2447_vm15 = vcmp.eq.f32.partialorder %v2437_v12, inf  ;;  %v2450_v18 = vand.u32 2147483648, %v2437_v12  ;;  %vm2449_vm1 = vcmp.eq.f32.partialorder %v2437_v12, 0.0 }
0x1872   :  { %v3288_v13 = vpop.eup %3287 }
0x1873   :  { %v2439_v14 = vmul.f32 %v3288_v13, %v2436_v11 }
0x1875   :  { %v2441_v4 = vsel %vm2440_vm13, %v2436_v11, %v2439_v14 }
0x1876   :  { %v3290_v52 = vpop.eup %3289  ;;  %v2444_v26 = vsel %vm2442_vm14, %v2443_v20, %v2441_v4 }
0x1877   :  { %v2452_v53 = vadd.f32 1e-06, %v2444_v26  ;;  %v2446_v54 = vmul.f32 %v3290_v52, %v2437_v12  ;;  %v2848_v52 = vld [vmem:[%s3962_s4 + $0xe] ss:$0 sm:$0xff] }
0x1879   :  { %3291 = vrcp.f32 %v2452_v53  ;;  %v2448_v21 = vsel %vm2447_vm15, %v2437_v12, %v2446_v54  ;;  %v2849_v54 = vld [vmem:[%s3962_s4 + $0xf] ss:$0 sm:$0xff] }
0x187a   :  { %v2451_v24 = vsel %vm2449_vm1, %v2450_v18, %v2448_v21 }
0x187b   :  { %v2453_v25 = vadd.f32 1e-06, %v2451_v24 }
0x187d   :  { %3293 = vrcp.f32 %v2453_v25 }
0x1886   :  { %v3292_v29 = vpop.eup %3291 }
0x1887   :  { %v2462_v34 = vmul.f32 %v3292_v29, %v2460_v27 }
0x1889   :  { %v2468_v33 = vadd.f32 %v2841_v30, %v2462_v34 }
0x188a   :  { %v3294_v16 = vpop.eup %3293 }
0x188b   :  { %v2463_v35 = vmul.f32 %v3294_v16, %v2461_v55  ;;  %3166 = vmatprep.mubr.msk.f32.mxu1 %vm81_vm0, %v2468_v33 }
0x188d   :  { %v2469_v36 = vadd.f32 %v2841_v30, %v2463_v35 }
0x188f   :  { %3167 = vmatmul.mubr.msk.f32.vlgmr.msra.gmra.mxu1 %vm81_vm0, %v2469_v36 }
0x194f   :  { %v3168_v41 = vpop.f32.mrf.mxu1 }
0x1950   :  { %v2552_v42 = vadd.f32 %v3168_v41, %v2842_v15 }
0x1951   :  { %v2546_v43 = vpop.f32.mrf.mxu1 }
0x1952   :  { %v2547_v44 = vadd.f32 %v2842_v15, %v2546_v43  ;;  %v2556_v17 = vmax.f32 %v2552_v42, 0.0 }
0x1954   :  { %v2555_v19 = vmax.f32 %v2547_v44, 0.0 }
0x1956   :  { %3185 = vmatprep.mubr.msk.f32.mxu0 %vm1242_vm8, %v2555_v19 }
0x1957   :  { %3186 = vmatmul.mubr.msk.f32.vlgmr.msra.gmra.mxu0 %vm1242_vm8, %v2556_v17 }
0x1a17   :  { %v3187_v45 = vpop.f32.mrf.mxu0 }
0x1a18   :  { %v2639_v46 = vadd.f32 %v3187_v45, %v2845_v32 }
0x1a19   :  { %v2633_v47 = vpop.f32.mrf.mxu0 }
0x1a1a   :  { %v2643_v48 = vadd.f32 %v2639_v46, %v2469_v36  ;;  %v2634_v49 = vadd.f32 %v2845_v32, %v2633_v47 }
0x1a1c   :  { %v2642_v50 = vadd.f32 %v2634_v49, %v2468_v33  ;;  %v2647_v31 = vsel %vm81_vm0, %v2643_v48, 0.0 }
0x1a1d   :  { %2648 = vadd.xlane.f32.xlu0 %v2647_v31 }
0x1a1e   :  { %v2644_v5 = vsel %vm81_vm0, %v2642_v50, 0.0 }
0x1a1f   :  { %2645 = vadd.xlane.f32.xlu1 %v2644_v5 }
0x1aa6   :  { %v2649_v2 = vpop.xlane.xlu0 %2648 }
0x1aa7   :  { %v2651_v51 = vmul.f32 0.03125, %v2649_v2  ;;  %v2850_v2 = vld [vmem:[%s3962_s4 + $0x10] ss:$0 sm:$0xff] }
0x1aa8   :  { %v2646_v56 = vpop.xlane.xlu1 %2645 }
0x1aa9   :  { %v2653_v57 = vsub.f32 %v2643_v48, %v2651_v51  ;;  %v2650_v58 = vmul.f32 0.03125, %v2646_v56 }
0x1aab   :  { %v2652_v59 = vsub.f32 %v2642_v50, %v2650_v58  ;;  %v2655_v60 = vmul.f32 %v2653_v57, %v2653_v57  ;;  %v2687_v26 = vmul.f32 %v2848_v52, %v2653_v57  ;;  %v2851_v57 = vld [vmem:[%s3962_s4 + $0x11] ss:$0 sm:$0xff] }
0x1aad   :  { %v2659_v61 = vsel %vm81_vm0, %v2655_v60, 0.0  ;;  %v2654_v62 = vmul.f32 %v2652_v59, %v2652_v59  ;;  %v2686_v21 = vmul.f32 %v2848_v52, %v2652_v59 }
0x1aae   :  { %2660 = vadd.xlane.f32.xlu0 %v2659_v61 }
0x1aaf   :  { %v2656_v23 = vsel %vm81_vm0, %v2654_v62, 0.0 }
0x1ab0   :  { %2657 = vadd.xlane.f32.xlu1 %v2656_v23 }
0x1b37   :  { %v2661_v22 = vpop.xlane.xlu0 %2660 }
0x1b38   :  { %v2663_v8 = vmul.f32 0.032258064, %v2661_v22 }
0x1b39   :  { %v2658_v0 = vpop.xlane.xlu1 %2657 }
0x1b3a   :  { %3295 = vrsqrt.f32 %v2663_v8  ;;  %v2662_v1 = vmul.f32 0.032258064, %v2658_v0  ;;  %vm2673_vm2 = vcmp.eq.f32.partialorder %v2663_v8, inf  ;;  %v2676_v6 = vand.u32 2147483648, %v2663_v8 }
0x1b3b   :  { %vm2675_vm3 = vcmp.eq.f32.partialorder %v2663_v8, 0.0 }
0x1b3c   :  { %3297 = vrsqrt.f32 %v2662_v1  ;;  %vm2666_vm4 = vcmp.eq.f32.partialorder %v2662_v1, inf  ;;  %v2669_v12 = vand.u32 2147483648, %v2662_v1  ;;  %vm2668_vm5 = vcmp.eq.f32.partialorder %v2662_v1, 0.0 }
0x1b47   :  { %v3296_v63 = vpop.eup %3295 }
0x1b48   :  { %v2672_v3 = vmul.f32 %v3296_v63, %v2663_v8 }
0x1b49   :  { %v3298_v7 = vpop.eup %3297 }
0x1b4a   :  { %v2674_v9 = vsel %vm2673_vm2, %v2663_v8, %v2672_v3  ;;  %v2665_v11 = vmul.f32 %v3298_v7, %v2662_v1 }
0x1b4b   :  { %v2677_v10 = vsel %vm2675_vm3, %v2676_v6, %v2674_v9 }
0x1b4c   :  { %v2679_v13 = vadd.f32 1e-06, %v2677_v10  ;;  %v2667_v14 = vsel %vm2666_vm4, %v2662_v1, %v2665_v11 }
0x1b4d   :  { %v2670_v20 = vsel %vm2668_vm5, %v2669_v12, %v2667_v14 }
0x1b4e   :  { %3299 = vrcp.f32 %v2679_v13  ;;  %v2678_v4 = vadd.f32 1e-06, %v2670_v20 }
0x1b50   :  { %3301 = vrcp.f32 %v2678_v4 }
0x1b5b   :  { %v3300_v53 = vpop.eup %3299 }
0x1b5c   :  { %v2689_v18 = vmul.f32 %v3300_v53, %v2687_v26 }
0x1b5d   :  { %v3302_v24 = vpop.eup %3301 }
0x1b5e   :  { %v2695_v25 = vadd.f32 %v2849_v54, %v2689_v18  ;;  %v2688_v28 = vmul.f32 %v3302_v24, %v2686_v21 }
0x1b60   :  { %v2701_v27 = vsel %vm81_vm0, %v2695_v25, 0.0  ;;  %v2694_v29 = vadd.f32 %v2849_v54, %v2688_v28 }
0x1b61   :  { %2702 = vadd.xlane.f32.xlu0 %v2701_v27 }
0x1b62   :  { %v2698_v30 = vsel %vm81_vm0, %v2694_v29, 0.0 }
0x1b63   :  { %2699 = vadd.xlane.f32.xlu1 %v2698_v30 }
0x1bea   :  { %v2703_v34 = vpop.xlane.xlu0 %2702 }
0x1beb   :  { %v2705_v55 = vmul.f32 0.03125, %v2703_v34 }
0x1bec   :  { %v2700_v16 = vpop.xlane.xlu1 %2699 }
0x1bed   :  { %v2707_v33 = vsub.f32 %v2695_v25, %v2705_v55  ;;  %v2704_v35 = vmul.f32 0.03125, %v2700_v16 }
0x1bef   :  { %v2709_v36 = vmul.f32 %v2707_v33, %v2707_v33  ;;  %v2706_v37 = vsub.f32 %v2694_v29, %v2704_v35  ;;  %v2741_v51 = vmul.f32 %v2850_v2, %v2707_v33 }
0x1bf1   :  { %v2713_v38 = vsel %vm81_vm0, %v2709_v36, 0.0  ;;  %v2708_v39 = vmul.f32 %v2706_v37, %v2706_v37  ;;  %v2740_v59 = vmul.f32 %v2850_v2, %v2706_v37 }
0x1bf2   :  { %2714 = vadd.xlane.f32.xlu0 %v2713_v38 }
0x1bf3   :  { %v2710_v40 = vsel %vm81_vm0, %v2708_v39, 0.0 }
0x1bf4   :  { %2711 = vadd.xlane.f32.xlu1 %v2710_v40 }
0x1c7b   :  { %v2715_v15 = vpop.xlane.xlu0 %2714 }
0x1c7c   :  { %v2717_v41 = vmul.f32 0.032258064, %v2715_v15 }
0x1c7d   :  { %v2712_v42 = vpop.xlane.xlu1 %2711 }
0x1c7e   :  { %3303 = vrsqrt.f32 %v2717_v41  ;;  %v2716_v43 = vmul.f32 0.032258064, %v2712_v42  ;;  %vm2727_vm6 = vcmp.eq.f32.partialorder %v2717_v41, inf  ;;  %v2730_v17 = vand.u32 2147483648, %v2717_v41 }
0x1c7f   :  { %vm2729_vm7 = vcmp.eq.f32.partialorder %v2717_v41, 0.0 }
0x1c80   :  { %3305 = vrsqrt.f32 %v2716_v43  ;;  %vm2720_vm8 = vcmp.eq.f32.partialorder %v2716_v43, inf  ;;  %v2723_v49 = vand.u32 2147483648, %v2716_v43  ;;  %vm2722_vm9 = vcmp.eq.f32.partialorder %v2716_v43, 0.0 }
0x1c8b   :  { %v3304_v44 = vpop.eup %3303 }
0x1c8c   :  { %v2726_v19 = vmul.f32 %v3304_v44, %v2717_v41 }
0x1c8d   :  { %v3306_v32 = vpop.eup %3305 }
0x1c8e   :  { %v2728_v45 = vsel %vm2727_vm6, %v2717_v41, %v2726_v19  ;;  %v2719_v47 = vmul.f32 %v3306_v32, %v2716_v43 }
0x1c8f   :  { %v2731_v46 = vsel %vm2729_vm7, %v2730_v17, %v2728_v45 }
0x1c90   :  { %v2733_v48 = vadd.f32 1e-06, %v2731_v46  ;;  %v2721_v50 = vsel %vm2720_vm8, %v2716_v43, %v2719_v47 }
0x1c91   :  { %v2724_v31 = vsel %vm2722_vm9, %v2723_v49, %v2721_v50 }
0x1c92   :  { %3307 = vrcp.f32 %v2733_v48  ;;  %v2732_v5 = vadd.f32 1e-06, %v2724_v31 }
0x1c94   :  { %3309 = vrcp.f32 %v2732_v5 }
0x1c9f   :  { %v3308_v56 = vpop.eup %3307 }
0x1ca0   :  { %v2743_v58 = vmul.f32 %v3308_v56, %v2741_v51 }
0x1ca1   :  { %v3310_v60 = vpop.eup %3309 }
0x1ca2   :  { %v2749_v61 = vadd.f32 %v2851_v57, %v2743_v58  ;;  %v2742_v62 = vmul.f32 %v3310_v60, %v2740_v59 }
0x1ca4   :  { %2751 = vst.msk [vmem:[#allocation7 + $0x8] sm:$0xff] %vm81_vm0, %v2749_v61  ;;  %v2748_v23 = vadd.f32 %v2851_v57, %v2742_v62 }
0x1ca6   :  { %2750 = vst.msk [vmem:[#allocation7] sm:$0xff] %vm81_vm0, %v2748_v23 }
0x1ca7   :  { %3364 = shalt.err (!%p3361_p0)
}
0x1ca8   :  { %2763 = dma.vmem_to_hbm [thread:$0]  %s2758_s8, 256, %s3963_s5, [#allocation4], %s3380_s21, %s3380_s21, %s3381_s22  }
0x1ca9   :  { %3377 = dma.done.wait [#allocation4], 256  }
0x1caa   :  { %3378 = vsyncadd [#allocation4], 4294967040 }
0x1cab   :  { %2767 = vsyncpa [#allocation3], 1 }
0x1cac   :  { %2768 = vsyncpa [#allocation6], 1 }
0x1cad   :  { %2769 = vsyncpa [#allocation4], 1 }

</bundles_post_ra>
